<compile_context>
chip_gen: v6e
topology: v6e:2x2x1
jax: 0.10.0
libtpu: 0.0.40
codegen_flags: <defaults>
</compile_context>

<pallas_src>
import jax
import jax.numpy as jnp
from jax.experimental import pallas as pl
from jax.experimental.pallas import tpu as pltpu


# ----------------------------------------------------------------------------
# Fused forward kernel
# ----------------------------------------------------------------------------
def _make_fused_kernel(N, lag, H, fea):
    """N nodes, lag timesteps, H = hid_dim = out_channels, fea = fea_dim."""
    H2 = 2 * H                      # fused I+V hidden width (64)
    # mat_pack row offsets (all static Python ints)
    r_att = 0                       # (lag, 2H)   time-attention W  [I | V]
    r_fc = r_att + lag              # (2H, 2H)    fc weights (block diag)
    r_g1 = r_fc + H2                # (2H+2F,2H)  GCN layer-1 weights (block diag)
    r_g2 = r_g1 + (H2 + 2 * fea)    # (2H, 2H)    GCN layer-2 weights (block diag)
    r_hd = r_g2 + H2                # (3H, 2H)    heads weights (cols 0..2 used)
    r_b = r_hd + 3 * H              # 4 bias rows: fc_b, gcn1_b, gcn2_b, heads_b

    def kernel(yx_ref, x_ref, a_ref, p_ref, m1_ref, m2_ref,
               whh_ref, mat_ref, vec_ref, o_ref):
        f32 = jnp.float32
        yx = yx_ref[...]                          # (N, lag)
        w_ih = vec_ref[0:1, :]                    # (1, 8H)  packed i|f|o|g, [I|V]
        bias = vec_ref[1:2, :]                    # (1, 8H)  b_ih + b_hh, same layout
        w_hh_T = whh_ref[...]                     # (2H, 8H) block-structured

        # ---- fused I+V LSTM recurrence (statically unrolled, register state) ----
        h = jnp.zeros((N, H2), f32)
        c = jnp.zeros((N, H2), f32)
        hts = []
        for t in range(lag):
            xt = yx[:, t:t + 1]                                        # (N, 1)
            gates = xt * w_ih + jnp.dot(h, w_hh_T,
                                        preferred_element_type=f32) + bias
            sg = jax.nn.sigmoid(gates[:, 0:3 * H2])                    # i | f | o
            gg = jnp.tanh(gates[:, 3 * H2:4 * H2])                     # g
            c = sg[:, H2:2 * H2] * c + sg[:, 0:H2] * gg
            h = sg[:, 2 * H2:3 * H2] * jnp.tanh(c)
            hts.append(h)                                              # (N, 2H)

        # ---- time attention (softmax over lag) for both branches ----
        w_att = mat_ref[r_att:r_att + lag, :]                          # (lag, 2H)
        sI, sV = [], []
        for t in range(lag):
            wtd = hts[t] * w_att[t:t + 1, :]
            sI.append(jnp.sum(wtd[:, :H], axis=1, keepdims=True))      # (N, 1)
            sV.append(jnp.sum(wtd[:, H:], axis=1, keepdims=True))
        mI, mV = sI[0], sV[0]
        for t in range(1, lag):
            mI = jnp.maximum(mI, sI[t])
            mV = jnp.maximum(mV, sV[t])
        eI = [jnp.exp(s - mI) for s in sI]
        eV = [jnp.exp(s - mV) for s in sV]
        dI, dV = eI[0], eV[0]
        for t in range(1, lag):
            dI = dI + eI[t]
            dV = dV + eV[t]
        accI = jnp.zeros((N, H), f32)
        accV = jnp.zeros((N, H), f32)
        for t in range(lag):
            accI = accI + eI[t] * hts[t][:, :H]
            accV = accV + eV[t] * hts[t][:, H:]
        att_ht = jnp.concatenate([accI / dI, accV / dV], axis=1)       # (N, 2H)

        # ---- fc + ReLU (both branches via block-diagonal weights) ----
        fc_wT = mat_ref[r_fc:r_fc + H2, :]
        fc_b = mat_ref[r_b:r_b + 1, :]
        x1 = jnp.maximum(
            jnp.dot(att_ht, fc_wT, preferred_element_type=f32) + fc_b, 0.0)

        # ---- GCN layer 1 (dropout fused, A resident once) ----
        node_x = x_ref[...]                                            # (N, F)
        xcom = jnp.concatenate([x1[:, :H], node_x, x1[:, H:], node_x], axis=1)
        d1 = xcom * m1_ref[...]                                        # dropout
        A = a_ref[...]                                                 # (N, N)
        g1_wT = mat_ref[r_g1:r_g1 + H2 + 2 * fea, :]
        g1_b = mat_ref[r_b + 1:r_b + 2, :]
        h1 = jnp.dot(A, jnp.dot(d1, g1_wT, preferred_element_type=f32),
                     preferred_element_type=f32) + g1_b                # (N, 2H)

        # ---- GCN layer 2 ----
        d2 = h1 * m2_ref[...]                                          # dropout
        g2_wT = mat_ref[r_g2:r_g2 + H2, :]
        g2_b = mat_ref[r_b + 2:r_b + 3, :]
        x2 = jnp.dot(A, jnp.dot(d2, g2_wT, preferred_element_type=f32),
                     preferred_element_type=f32) + g2_b                # [x2I | x2V]

        # ---- permutation (one-hot matmul) + heads (single MXU matmul) ----
        x2V_star = jnp.dot(p_ref[...], x2[:, H:], preferred_element_type=f32)
        feats = jnp.concatenate([x2, x2V_star], axis=1)                # (N, 3H)
        hd_w = mat_ref[r_hd:r_hd + 3 * H, :]
        hd_b = mat_ref[r_b + 3:r_b + 4, :]
        heads = jnp.maximum(
            jnp.dot(feats, hd_w, preferred_element_type=f32) + hd_b, 0.0)

        # ---- single lane-dense (N, 4H) = (N, 128) output ----
        o_ref[...] = jnp.concatenate([x2, heads], axis=1)

    return kernel


# ----------------------------------------------------------------------------
# Parameter packing (host-side, done once)
# ----------------------------------------------------------------------------
def pack_params(params, lag, fea_dim=4, hid_dim=32, out_channels=32):
    assert hid_dim == out_channels, "packed layout assumes hid_dim == out_channels"
    H = hid_dim
    f32 = jnp.float32
    pI, pV = params["att_lstm_I"], params["att_lstm_V"]

    def gate_reorder_cols(wI, wV):
        # wI/wV: (4H, k) in PyTorch row order [i, f, g, o]
        # -> (k, 8H) columns ordered [i_I, i_V, f_I, f_V, o_I, o_V, g_I, g_V]
        def gs(w):
            return w[0:H], w[H:2 * H], w[2 * H:3 * H], w[3 * H:4 * H]
        iI, fI, gI, oI = gs(wI)
        iV, fV, gV, oV = gs(wV)
        return jnp.concatenate([iI, iV, fI, fV, oI, oV, gI, gV], axis=0).T

    w_ih = gate_reorder_cols(pI["w_ih"], pV["w_ih"])                    # (1, 8H)
    b = gate_reorder_cols((pI["b_ih"] + pI["b_hh"])[:, None],
                          (pV["b_ih"] + pV["b_hh"])[:, None])           # (1, 8H)

    def pack_whh(wI, wV):
        z = jnp.zeros((H, H), f32)
        cols = []
        for lo in (0, H, 3 * H, 2 * H):                 # i, f, o, g gate order
            cols.append(jnp.concatenate([wI[lo:lo + H].T, z], axis=0))  # I branch
            cols.append(jnp.concatenate([z, wV[lo:lo + H].T], axis=0))  # V branch
        return jnp.concatenate(cols, axis=1)                            # (2H, 8H)

    w_hh_T = pack_whh(pI["w_hh"], pV["w_hh"])

    def block_diag2(a, c):
        ra, ca = a.shape
        rc, cc = c.shape
        top = jnp.concatenate([a, jnp.zeros((ra, cc), f32)], axis=1)
        bot = jnp.concatenate([jnp.zeros((rc, ca), f32), c], axis=1)
        return jnp.concatenate([top, bot], axis=0)

    w_att = jnp.concatenate([pI["w_att"], pV["w_att"]], axis=1)         # (lag, 2H)
    fc_wT = block_diag2(pI["fc_w"].T, pV["fc_w"].T)                     # (2H, 2H)
    fc_b = jnp.concatenate([pI["fc_b"], pV["fc_b"]])

    gcn1_wT = block_diag2(params["gcn_I1"]["w"].T, params["gcn_V1"]["w"].T)
    gcn1_b = jnp.concatenate([params["gcn_I1"]["b"], params["gcn_V1"]["b"]])
    gcn2_wT = block_diag2(params["gcn_I2"]["w"].T, params["gcn_V2"]["w"].T)
    gcn2_b = jnp.concatenate([params["gcn_I2"]["b"], params["gcn_V2"]["b"]])

    hd = params["heads"]
    C = out_channels
    ws = hd["w_sales"][0]
    ws_I, ws_V = ws[:C], ws[C:]
    wv = hd["w_inc_V"][0]
    wi = hd["w_inc_I"][0]
    zC = jnp.zeros((C,), f32)
    col0 = jnp.concatenate([ws_I, ws_V, zC])            # pred
    col1 = jnp.concatenate([ws_I, zC, ws_V])            # pred on [x2I, x2V_star]
    col2 = jnp.concatenate([wi, wv, zC])                # pred_inc
    heads_w = jnp.stack([col0, col1, col2], axis=1)                     # (3C, 3)
    heads_w = jnp.pad(heads_w, ((0, 0), (0, 2 * C - 3)))                # (3C, 2C)
    heads_b = jnp.zeros((2 * C,), f32)
    heads_b = heads_b.at[0].set(hd["b_sales"][0])
    heads_b = heads_b.at[1].set(hd["b_sales"][0])
    heads_b = heads_b.at[2].set(hd["b_inc_V"][0] + hd["b_inc_I"][0])

    mat_pack = jnp.concatenate(
        [w_att, fc_wT, gcn1_wT, gcn2_wT, heads_w,
         fc_b[None, :], gcn1_b[None, :], gcn2_b[None, :], heads_b[None, :]],
        axis=0)                                                         # (3H+lag+... , 2H)
    vec_pack = jnp.concatenate([w_ih, b], axis=0)                       # (2, 8H)

    return dict(w_hh_T=w_hh_T, mat_pack=mat_pack, vec_pack=vec_pack)


# ----------------------------------------------------------------------------
# Plain-JAX glue (graph normalization, permutation matrix, dropout masks)
# ----------------------------------------------------------------------------
def build_gcn_adj(edge_index, edge_weight, num_nodes):
    """Dense GCN-normalized adjacency with self loops (torch_geometric gcn_norm)."""
    row = edge_index[0]
    col = edge_index[1]
    loop = jnp.arange(num_nodes, dtype=edge_index.dtype)
    row = jnp.concatenate([row, loop])
    col = jnp.concatenate([col, loop])
    w = jnp.concatenate([edge_weight, jnp.ones((num_nodes,), edge_weight.dtype)])
    deg = jnp.zeros((num_nodes,), edge_weight.dtype).at[col].add(w)
    dinv = jnp.where(deg > 0, jax.lax.rsqrt(deg), 0.0)
    norm = dinv[row] * w * dinv[col]
    # out[target] += norm * xW[source]  ->  A[col, row] accumulates norm
    A = jnp.zeros((num_nodes, num_nodes), edge_weight.dtype).at[col, row].add(norm)
    return A


def trendspot_forward(packed, node_x, node_yx, edge_index, edge_weight, key,
                      training=True):
    N, fea = node_x.shape
    lag = node_yx.shape[1]
    H2 = packed["w_hh_T"].shape[0]
    H = H2 // 2
    drop = 0.5

    k1, k2, kperm = jax.random.split(key, 3)

    A = build_gcn_adj(edge_index, edge_weight, N)
    perm = jax.random.permutation(kperm, N)               # torch.randperm analogue
    P = jnp.zeros((N, N), jnp.float32).at[jnp.arange(N), perm].set(1.0)

    if training:
        keep = 1.0 - drop
        m1 = jax.random.bernoulli(k1, keep, (N, H2 + 2 * fea)).astype(jnp.float32) / keep
        m2 = jax.random.bernoulli(k2, keep, (N, H2)).astype(jnp.float32) / keep
    else:
        m1 = jnp.ones((N, H2 + 2 * fea), jnp.float32)
        m2 = jnp.ones((N, H2), jnp.float32)

    kernel = _make_fused_kernel(N, lag, H, fea)
    vmem = pl.BlockSpec(memory_space=pltpu.MemorySpace.VMEM)
    out = pl.pallas_call(
        kernel,
        out_shape=jax.ShapeDtypeStruct((N, 4 * H), jnp.float32),
        in_specs=[vmem] * 9,
        out_specs=vmem,
    )(node_yx, node_x, A, P, m1, m2,
      packed["w_hh_T"], packed["mat_pack"], packed["vec_pack"])

    # slice the single lane-dense output: [x2I | x2V | pred, pred*, pred_inc, 0...]
    x2I = out[:, :H]
    x2V = out[:, H:H2]
    pred = out[:, H2]
    pred_Vstar = out[:, H2 + 1]
    pred_inc = out[:, H2 + 2:H2 + 3]
    return pred, pred_Vstar, pred_inc, x2I, x2V


# ----------------------------------------------------------------------------
# Deterministic parameter initialization (shapes follow the PyTorch __init__)
# ----------------------------------------------------------------------------
def init_params(key, lag, in_dim=1, fea_dim=4, hid_dim=32,
                in_channels=32, out_channels=32):
    keys = iter(jax.random.split(key, 64))

    def nrm(shape, scale=0.1):
        return (scale * jax.random.normal(next(keys), shape)).astype(jnp.float32)

    def att_lstm_branch():
        return dict(
            w_ih=nrm((4 * hid_dim, in_dim)),
            w_hh=nrm((4 * hid_dim, hid_dim)),
            b_ih=nrm((4 * hid_dim,)),
            b_hh=nrm((4 * hid_dim,)),
            w_att=nrm((lag, hid_dim)),
            fc_w=nrm((out_channels, hid_dim)),
            fc_b=nrm((out_channels,)),
        )

    def gcn_branch(cin, cout):
        return dict(w=nrm((cout, cin)), b=nrm((cout,)))

    return dict(
        att_lstm_I=att_lstm_branch(),
        att_lstm_V=att_lstm_branch(),
        gcn_I1=gcn_branch(in_channels + fea_dim, hid_dim),
        gcn_I2=gcn_branch(hid_dim, out_channels),
        gcn_V1=gcn_branch(in_channels + fea_dim, hid_dim),
        gcn_V2=gcn_branch(hid_dim, out_channels),
        heads=dict(
            w_sales=nrm((1, out_channels * 2)),
            b_sales=nrm((1,)),
            w_inc_V=nrm((1, out_channels)),
            b_inc_V=nrm((1,)),
            w_inc_I=nrm((1, out_channels)),
            b_inc_I=nrm((1,)),
        ),
    )


if __name__ == "__main__":
    lag, N, fea_dim = 8, 16, 4
    key = jax.random.PRNGKey(0)
    kp, kx, kyx, kw, kfwd = jax.random.split(key, 5)

    params = init_params(kp, lag, fea_dim=fea_dim)
    packed = pack_params(params, lag, fea_dim=fea_dim)          # one-time packing

    node_x = jax.random.normal(kx, (N, fea_dim), jnp.float32)   # data.x[0]
    node_yx = jax.random.normal(kyx, (N, lag), jnp.float32)     # data.x[1]

    # bidirectional ring graph
    src = jnp.arange(N, dtype=jnp.int32)
    dst = jnp.roll(src, -1)
    edge_index = jnp.stack([jnp.concatenate([src, dst]),
                            jnp.concatenate([dst, src])])        # (2, 2N)
    edge_weight = jax.random.uniform(kw, (2 * N,), jnp.float32, 0.5, 1.5)

    fwd = jax.jit(trendspot_forward, static_argnames=("training",))
    outs = fwd(packed, node_x, node_yx, edge_index, edge_weight, kfwd)
    jax.block_until_ready(outs)

    pred, pred_Vstar, pred_inc, x2I, x2V = outs
    assert pred.shape == (N,) and pred_Vstar.shape == (N,)
    assert pred_inc.shape == (N, 1) and x2I.shape == (N, 32) and x2V.shape == (N, 32)
    print("KERNEL_OK")
</pallas_src>

<mosaic_0001>
module attributes {stable_mosaic.version = 11 : i64} {
  func.func private @main(%arg0: i32) attributes {dimension_semantics = [#tpu.dimension_semantics<core_parallel>], iteration_bounds = array<i64: 2>, tpu.core_type = #tpu.core_type<sc_scalar_subcore>, window_params = []} {
    return
  }
}

module attributes {stable_mosaic.version = 11 : i64} {
  func.func private @main(%arg0: i32) attributes {dimension_semantics = [#tpu.dimension_semantics<core_parallel>], iteration_bounds = array<i64: 2>, tpu.core_type = #tpu.core_type<sc_scalar_subcore>, window_params = []} {
    return
  }
}

module attributes {stable_mosaic.version = 11 : i64} {
  func.func @kernel(%arg0: memref<16x8xf32, #tpu.memory_space<vmem>>, %arg1: memref<16x4xf32, #tpu.memory_space<vmem>>, %arg2: memref<16x16xf32, #tpu.memory_space<vmem>>, %arg3: memref<16x16xf32, #tpu.memory_space<vmem>>, %arg4: memref<16x72xf32, #tpu.memory_space<vmem>>, %arg5: memref<16x64xf32, #tpu.memory_space<vmem>>, %arg6: memref<64x256xf32, #tpu.memory_space<vmem>>, %arg7: memref<308x64xf32, #tpu.memory_space<vmem>>, %arg8: memref<2x256xf32, #tpu.memory_space<vmem>>, %arg9: memref<16x128xf32, #tpu.memory_space<vmem>>) attributes {dimension_semantics = [], scalar_prefetch = 0 : i64, scratch_operands = 0 : i64, tpu.core_type = #tpu.core_type<tc>} {
    %c0 = arith.constant 0 : index
    %c0_0 = arith.constant 0 : index
    %0 = vector.load %arg0[%c0, %c0_0] : memref<16x8xf32, #tpu.memory_space<vmem>>, vector<16x8xf32>
    %c0_1 = arith.constant 0 : index
    %c0_2 = arith.constant 0 : index
    %1 = vector.load %arg8[%c0_1, %c0_2] : memref<2x256xf32, #tpu.memory_space<vmem>>, vector<1x256xf32>
    %c1 = arith.constant 1 : index
    %c0_3 = arith.constant 0 : index
    %2 = vector.load %arg8[%c1, %c0_3] : memref<2x256xf32, #tpu.memory_space<vmem>>, vector<1x256xf32>
    %c0_4 = arith.constant 0 : index
    %c0_5 = arith.constant 0 : index
    %3 = vector.load %arg6[%c0_4, %c0_5] : memref<64x256xf32, #tpu.memory_space<vmem>>, vector<64x256xf32>
    %cst = arith.constant 0.000000e+00 : f32
    %4 = vector.broadcast %cst : f32 to vector<16x64xf32>
    %cst_6 = arith.constant 0.000000e+00 : f32
    %5 = vector.broadcast %cst_6 : f32 to vector<16x64xf32>
    %6 = vector.extract_strided_slice %0 {offsets = [0, 0], sizes = [16, 1], strides = [1, 1]} : vector<16x8xf32> to vector<16x1xf32>
    %7 = vector.broadcast %6 : vector<16x1xf32> to vector<16x256xf32>
    %8 = vector.broadcast %1 : vector<1x256xf32> to vector<16x256xf32>
    %9 = arith.mulf %7, %8 : vector<16x256xf32>
    %cst_7 = arith.constant dense<0.000000e+00> : vector<16x256xf32>
    %10 = tpu.matmul %4, %3, %cst_7 {dimension_numbers = #tpu.dot_dimension_numbers<[1], [0], [0], [1], [0, 0, 1, 1], [], []>} : vector<16x64xf32>, vector<64x256xf32>, vector<16x256xf32> -> vector<16x256xf32>
    %11 = arith.addf %9, %10 : vector<16x256xf32>
    %12 = vector.broadcast %2 : vector<1x256xf32> to vector<16x256xf32>
    %13 = arith.addf %11, %12 : vector<16x256xf32>
    %14 = vector.extract_strided_slice %13 {offsets = [0, 0], sizes = [16, 192], strides = [1, 1]} : vector<16x256xf32> to vector<16x192xf32>
    %15 = arith.negf %14 : vector<16x192xf32>
    %16 = math.exp %15 : vector<16x192xf32>
    %cst_8 = arith.constant 1.000000e+00 : f32
    %17 = vector.broadcast %cst_8 : f32 to vector<16x192xf32>
    %18 = arith.addf %17, %16 : vector<16x192xf32>
    %19 = arith.divf %17, %18 : vector<16x192xf32>
    %20 = vector.extract_strided_slice %13 {offsets = [0, 192], sizes = [16, 64], strides = [1, 1]} : vector<16x256xf32> to vector<16x64xf32>
    %21 = math.tanh %20 : vector<16x64xf32>
    %22 = vector.extract_strided_slice %19 {offsets = [0, 64], sizes = [16, 64], strides = [1, 1]} : vector<16x192xf32> to vector<16x64xf32>
    %23 = arith.mulf %22, %5 : vector<16x64xf32>
    %24 = vector.extract_strided_slice %19 {offsets = [0, 0], sizes = [16, 64], strides = [1, 1]} : vector<16x192xf32> to vector<16x64xf32>
    %25 = arith.mulf %24, %21 : vector<16x64xf32>
    %26 = arith.addf %23, %25 : vector<16x64xf32>
    %27 = vector.extract_strided_slice %19 {offsets = [0, 128], sizes = [16, 64], strides = [1, 1]} : vector<16x192xf32> to vector<16x64xf32>
    %28 = math.tanh %26 : vector<16x64xf32>
    %29 = arith.mulf %27, %28 : vector<16x64xf32>
    %30 = vector.extract_strided_slice %0 {offsets = [0, 1], sizes = [16, 1], strides = [1, 1]} : vector<16x8xf32> to vector<16x1xf32>
    %31 = vector.broadcast %30 : vector<16x1xf32> to vector<16x256xf32>
    %32 = vector.broadcast %1 : vector<1x256xf32> to vector<16x256xf32>
    %33 = arith.mulf %31, %32 : vector<16x256xf32>
    %cst_9 = arith.constant dense<0.000000e+00> : vector<16x256xf32>
    %34 = tpu.matmul %29, %3, %cst_9 {dimension_numbers = #tpu.dot_dimension_numbers<[1], [0], [0], [1], [0, 0, 1, 1], [], []>} : vector<16x64xf32>, vector<64x256xf32>, vector<16x256xf32> -> vector<16x256xf32>
    %35 = arith.addf %33, %34 : vector<16x256xf32>
    %36 = vector.broadcast %2 : vector<1x256xf32> to vector<16x256xf32>
    %37 = arith.addf %35, %36 : vector<16x256xf32>
    %38 = vector.extract_strided_slice %37 {offsets = [0, 0], sizes = [16, 192], strides = [1, 1]} : vector<16x256xf32> to vector<16x192xf32>
    %39 = arith.negf %38 : vector<16x192xf32>
    %40 = math.exp %39 : vector<16x192xf32>
    %cst_10 = arith.constant 1.000000e+00 : f32
    %41 = vector.broadcast %cst_10 : f32 to vector<16x192xf32>
    %42 = arith.addf %41, %40 : vector<16x192xf32>
    %43 = arith.divf %41, %42 : vector<16x192xf32>
    %44 = vector.extract_strided_slice %37 {offsets = [0, 192], sizes = [16, 64], strides = [1, 1]} : vector<16x256xf32> to vector<16x64xf32>
    %45 = math.tanh %44 : vector<16x64xf32>
    %46 = vector.extract_strided_slice %43 {offsets = [0, 64], sizes = [16, 64], strides = [1, 1]} : vector<16x192xf32> to vector<16x64xf32>
    %47 = arith.mulf %46, %26 : vector<16x64xf32>
    %48 = vector.extract_strided_slice %43 {offsets = [0, 0], sizes = [16, 64], strides = [1, 1]} : vector<16x192xf32> to vector<16x64xf32>
    %49 = arith.mulf %48, %45 : vector<16x64xf32>
    %50 = arith.addf %47, %49 : vector<16x64xf32>
    %51 = vector.extract_strided_slice %43 {offsets = [0, 128], sizes = [16, 64], strides = [1, 1]} : vector<16x192xf32> to vector<16x64xf32>
    %52 = math.tanh %50 : vector<16x64xf32>
    %53 = arith.mulf %51, %52 : vector<16x64xf32>
    %54 = vector.extract_strided_slice %0 {offsets = [0, 2], sizes = [16, 1], strides = [1, 1]} : vector<16x8xf32> to vector<16x1xf32>
    %55 = vector.broadcast %54 : vector<16x1xf32> to vector<16x256xf32>
    %56 = vector.broadcast %1 : vector<1x256xf32> to vector<16x256xf32>
    %57 = arith.mulf %55, %56 : vector<16x256xf32>
    %cst_11 = arith.constant dense<0.000000e+00> : vector<16x256xf32>
    %58 = tpu.matmul %53, %3, %cst_11 {dimension_numbers = #tpu.dot_dimension_numbers<[1], [0], [0], [1], [0, 0, 1, 1], [], []>} : vector<16x64xf32>, vector<64x256xf32>, vector<16x256xf32> -> vector<16x256xf32>
    %59 = arith.addf %57, %58 : vector<16x256xf32>
    %60 = vector.broadcast %2 : vector<1x256xf32> to vector<16x256xf32>
    %61 = arith.addf %59, %60 : vector<16x256xf32>
    %62 = vector.extract_strided_slice %61 {offsets = [0, 0], sizes = [16, 192], strides = [1, 1]} : vector<16x256xf32> to vector<16x192xf32>
    %63 = arith.negf %62 : vector<16x192xf32>
    %64 = math.exp %63 : vector<16x192xf32>
    %cst_12 = arith.constant 1.000000e+00 : f32
    %65 = vector.broadcast %cst_12 : f32 to vector<16x192xf32>
    %66 = arith.addf %65, %64 : vector<16x192xf32>
    %67 = arith.divf %65, %66 : vector<16x192xf32>
    %68 = vector.extract_strided_slice %61 {offsets = [0, 192], sizes = [16, 64], strides = [1, 1]} : vector<16x256xf32> to vector<16x64xf32>
    %69 = math.tanh %68 : vector<16x64xf32>
    %70 = vector.extract_strided_slice %67 {offsets = [0, 64], sizes = [16, 64], strides = [1, 1]} : vector<16x192xf32> to vector<16x64xf32>
    %71 = arith.mulf %70, %50 : vector<16x64xf32>
    %72 = vector.extract_strided_slice %67 {offsets = [0, 0], sizes = [16, 64], strides = [1, 1]} : vector<16x192xf32> to vector<16x64xf32>
    %73 = arith.mulf %72, %69 : vector<16x64xf32>
    %74 = arith.addf %71, %73 : vector<16x64xf32>
    %75 = vector.extract_strided_slice %67 {offsets = [0, 128], sizes = [16, 64], strides = [1, 1]} : vector<16x192xf32> to vector<16x64xf32>
    %76 = math.tanh %74 : vector<16x64xf32>
    %77 = arith.mulf %75, %76 : vector<16x64xf32>
    %78 = vector.extract_strided_slice %0 {offsets = [0, 3], sizes = [16, 1], strides = [1, 1]} : vector<16x8xf32> to vector<16x1xf32>
    %79 = vector.broadcast %78 : vector<16x1xf32> to vector<16x256xf32>
    %80 = vector.broadcast %1 : vector<1x256xf32> to vector<16x256xf32>
    %81 = arith.mulf %79, %80 : vector<16x256xf32>
    %cst_13 = arith.constant dense<0.000000e+00> : vector<16x256xf32>
    %82 = tpu.matmul %77, %3, %cst_13 {dimension_numbers = #tpu.dot_dimension_numbers<[1], [0], [0], [1], [0, 0, 1, 1], [], []>} : vector<16x64xf32>, vector<64x256xf32>, vector<16x256xf32> -> vector<16x256xf32>
    %83 = arith.addf %81, %82 : vector<16x256xf32>
    %84 = vector.broadcast %2 : vector<1x256xf32> to vector<16x256xf32>
    %85 = arith.addf %83, %84 : vector<16x256xf32>
    %86 = vector.extract_strided_slice %85 {offsets = [0, 0], sizes = [16, 192], strides = [1, 1]} : vector<16x256xf32> to vector<16x192xf32>
    %87 = arith.negf %86 : vector<16x192xf32>
    %88 = math.exp %87 : vector<16x192xf32>
    %cst_14 = arith.constant 1.000000e+00 : f32
    %89 = vector.broadcast %cst_14 : f32 to vector<16x192xf32>
    %90 = arith.addf %89, %88 : vector<16x192xf32>
    %91 = arith.divf %89, %90 : vector<16x192xf32>
    %92 = vector.extract_strided_slice %85 {offsets = [0, 192], sizes = [16, 64], strides = [1, 1]} : vector<16x256xf32> to vector<16x64xf32>
    %93 = math.tanh %92 : vector<16x64xf32>
    %94 = vector.extract_strided_slice %91 {offsets = [0, 64], sizes = [16, 64], strides = [1, 1]} : vector<16x192xf32> to vector<16x64xf32>
    %95 = arith.mulf %94, %74 : vector<16x64xf32>
    %96 = vector.extract_strided_slice %91 {offsets = [0, 0], sizes = [16, 64], strides = [1, 1]} : vector<16x192xf32> to vector<16x64xf32>
    %97 = arith.mulf %96, %93 : vector<16x64xf32>
    %98 = arith.addf %95, %97 : vector<16x64xf32>
    %99 = vector.extract_strided_slice %91 {offsets = [0, 128], sizes = [16, 64], strides = [1, 1]} : vector<16x192xf32> to vector<16x64xf32>
    %100 = math.tanh %98 : vector<16x64xf32>
    %101 = arith.mulf %99, %100 : vector<16x64xf32>
    %102 = vector.extract_strided_slice %0 {offsets = [0, 4], sizes = [16, 1], strides = [1, 1]} : vector<16x8xf32> to vector<16x1xf32>
    %103 = vector.broadcast %102 : vector<16x1xf32> to vector<16x256xf32>
    %104 = vector.broadcast %1 : vector<1x256xf32> to vector<16x256xf32>
    %105 = arith.mulf %103, %104 : vector<16x256xf32>
    %cst_15 = arith.constant dense<0.000000e+00> : vector<16x256xf32>
    %106 = tpu.matmul %101, %3, %cst_15 {dimension_numbers = #tpu.dot_dimension_numbers<[1], [0], [0], [1], [0, 0, 1, 1], [], []>} : vector<16x64xf32>, vector<64x256xf32>, vector<16x256xf32> -> vector<16x256xf32>
    %107 = arith.addf %105, %106 : vector<16x256xf32>
    %108 = vector.broadcast %2 : vector<1x256xf32> to vector<16x256xf32>
    %109 = arith.addf %107, %108 : vector<16x256xf32>
    %110 = vector.extract_strided_slice %109 {offsets = [0, 0], sizes = [16, 192], strides = [1, 1]} : vector<16x256xf32> to vector<16x192xf32>
    %111 = arith.negf %110 : vector<16x192xf32>
    %112 = math.exp %111 : vector<16x192xf32>
    %cst_16 = arith.constant 1.000000e+00 : f32
    %113 = vector.broadcast %cst_16 : f32 to vector<16x192xf32>
    %114 = arith.addf %113, %112 : vector<16x192xf32>
    %115 = arith.divf %113, %114 : vector<16x192xf32>
    %116 = vector.extract_strided_slice %109 {offsets = [0, 192], sizes = [16, 64], strides = [1, 1]} : vector<16x256xf32> to vector<16x64xf32>
    %117 = math.tanh %116 : vector<16x64xf32>
    %118 = vector.extract_strided_slice %115 {offsets = [0, 64], sizes = [16, 64], strides = [1, 1]} : vector<16x192xf32> to vector<16x64xf32>
    %119 = arith.mulf %118, %98 : vector<16x64xf32>
    %120 = vector.extract_strided_slice %115 {offsets = [0, 0], sizes = [16, 64], strides = [1, 1]} : vector<16x192xf32> to vector<16x64xf32>
    %121 = arith.mulf %120, %117 : vector<16x64xf32>
    %122 = arith.addf %119, %121 : vector<16x64xf32>
    %123 = vector.extract_strided_slice %115 {offsets = [0, 128], sizes = [16, 64], strides = [1, 1]} : vector<16x192xf32> to vector<16x64xf32>
    %124 = math.tanh %122 : vector<16x64xf32>
    %125 = arith.mulf %123, %124 : vector<16x64xf32>
    %126 = vector.extract_strided_slice %0 {offsets = [0, 5], sizes = [16, 1], strides = [1, 1]} : vector<16x8xf32> to vector<16x1xf32>
    %127 = vector.broadcast %126 : vector<16x1xf32> to vector<16x256xf32>
    %128 = vector.broadcast %1 : vector<1x256xf32> to vector<16x256xf32>
    %129 = arith.mulf %127, %128 : vector<16x256xf32>
    %cst_17 = arith.constant dense<0.000000e+00> : vector<16x256xf32>
    %130 = tpu.matmul %125, %3, %cst_17 {dimension_numbers = #tpu.dot_dimension_numbers<[1], [0], [0], [1], [0, 0, 1, 1], [], []>} : vector<16x64xf32>, vector<64x256xf32>, vector<16x256xf32> -> vector<16x256xf32>
    %131 = arith.addf %129, %130 : vector<16x256xf32>
    %132 = vector.broadcast %2 : vector<1x256xf32> to vector<16x256xf32>
    %133 = arith.addf %131, %132 : vector<16x256xf32>
    %134 = vector.extract_strided_slice %133 {offsets = [0, 0], sizes = [16, 192], strides = [1, 1]} : vector<16x256xf32> to vector<16x192xf32>
    %135 = arith.negf %134 : vector<16x192xf32>
    %136 = math.exp %135 : vector<16x192xf32>
    %cst_18 = arith.constant 1.000000e+00 : f32
    %137 = vector.broadcast %cst_18 : f32 to vector<16x192xf32>
    %138 = arith.addf %137, %136 : vector<16x192xf32>
    %139 = arith.divf %137, %138 : vector<16x192xf32>
    %140 = vector.extract_strided_slice %133 {offsets = [0, 192], sizes = [16, 64], strides = [1, 1]} : vector<16x256xf32> to vector<16x64xf32>
    %141 = math.tanh %140 : vector<16x64xf32>
    %142 = vector.extract_strided_slice %139 {offsets = [0, 64], sizes = [16, 64], strides = [1, 1]} : vector<16x192xf32> to vector<16x64xf32>
    %143 = arith.mulf %142, %122 : vector<16x64xf32>
    %144 = vector.extract_strided_slice %139 {offsets = [0, 0], sizes = [16, 64], strides = [1, 1]} : vector<16x192xf32> to vector<16x64xf32>
    %145 = arith.mulf %144, %141 : vector<16x64xf32>
    %146 = arith.addf %143, %145 : vector<16x64xf32>
    %147 = vector.extract_strided_slice %139 {offsets = [0, 128], sizes = [16, 64], strides = [1, 1]} : vector<16x192xf32> to vector<16x64xf32>
    %148 = math.tanh %146 : vector<16x64xf32>
    %149 = arith.mulf %147, %148 : vector<16x64xf32>
    %150 = vector.extract_strided_slice %0 {offsets = [0, 6], sizes = [16, 1], strides = [1, 1]} : vector<16x8xf32> to vector<16x1xf32>
    %151 = vector.broadcast %150 : vector<16x1xf32> to vector<16x256xf32>
    %152 = vector.broadcast %1 : vector<1x256xf32> to vector<16x256xf32>
    %153 = arith.mulf %151, %152 : vector<16x256xf32>
    %cst_19 = arith.constant dense<0.000000e+00> : vector<16x256xf32>
    %154 = tpu.matmul %149, %3, %cst_19 {dimension_numbers = #tpu.dot_dimension_numbers<[1], [0], [0], [1], [0, 0, 1, 1], [], []>} : vector<16x64xf32>, vector<64x256xf32>, vector<16x256xf32> -> vector<16x256xf32>
    %155 = arith.addf %153, %154 : vector<16x256xf32>
    %156 = vector.broadcast %2 : vector<1x256xf32> to vector<16x256xf32>
    %157 = arith.addf %155, %156 : vector<16x256xf32>
    %158 = vector.extract_strided_slice %157 {offsets = [0, 0], sizes = [16, 192], strides = [1, 1]} : vector<16x256xf32> to vector<16x192xf32>
    %159 = arith.negf %158 : vector<16x192xf32>
    %160 = math.exp %159 : vector<16x192xf32>
    %cst_20 = arith.constant 1.000000e+00 : f32
    %161 = vector.broadcast %cst_20 : f32 to vector<16x192xf32>
    %162 = arith.addf %161, %160 : vector<16x192xf32>
    %163 = arith.divf %161, %162 : vector<16x192xf32>
    %164 = vector.extract_strided_slice %157 {offsets = [0, 192], sizes = [16, 64], strides = [1, 1]} : vector<16x256xf32> to vector<16x64xf32>
    %165 = math.tanh %164 : vector<16x64xf32>
    %166 = vector.extract_strided_slice %163 {offsets = [0, 64], sizes = [16, 64], strides = [1, 1]} : vector<16x192xf32> to vector<16x64xf32>
    %167 = arith.mulf %166, %146 : vector<16x64xf32>
    %168 = vector.extract_strided_slice %163 {offsets = [0, 0], sizes = [16, 64], strides = [1, 1]} : vector<16x192xf32> to vector<16x64xf32>
    %169 = arith.mulf %168, %165 : vector<16x64xf32>
    %170 = arith.addf %167, %169 : vector<16x64xf32>
    %171 = vector.extract_strided_slice %163 {offsets = [0, 128], sizes = [16, 64], strides = [1, 1]} : vector<16x192xf32> to vector<16x64xf32>
    %172 = math.tanh %170 : vector<16x64xf32>
    %173 = arith.mulf %171, %172 : vector<16x64xf32>
    %174 = vector.extract_strided_slice %0 {offsets = [0, 7], sizes = [16, 1], strides = [1, 1]} : vector<16x8xf32> to vector<16x1xf32>
    %175 = vector.broadcast %174 : vector<16x1xf32> to vector<16x256xf32>
    %176 = vector.broadcast %1 : vector<1x256xf32> to vector<16x256xf32>
    %177 = arith.mulf %175, %176 : vector<16x256xf32>
    %cst_21 = arith.constant dense<0.000000e+00> : vector<16x256xf32>
    %178 = tpu.matmul %173, %3, %cst_21 {dimension_numbers = #tpu.dot_dimension_numbers<[1], [0], [0], [1], [0, 0, 1, 1], [], []>} : vector<16x64xf32>, vector<64x256xf32>, vector<16x256xf32> -> vector<16x256xf32>
    %179 = arith.addf %177, %178 : vector<16x256xf32>
    %180 = vector.broadcast %2 : vector<1x256xf32> to vector<16x256xf32>
    %181 = arith.addf %179, %180 : vector<16x256xf32>
    %182 = vector.extract_strided_slice %181 {offsets = [0, 0], sizes = [16, 192], strides = [1, 1]} : vector<16x256xf32> to vector<16x192xf32>
    %183 = arith.negf %182 : vector<16x192xf32>
    %184 = math.exp %183 : vector<16x192xf32>
    %cst_22 = arith.constant 1.000000e+00 : f32
    %185 = vector.broadcast %cst_22 : f32 to vector<16x192xf32>
    %186 = arith.addf %185, %184 : vector<16x192xf32>
    %187 = arith.divf %185, %186 : vector<16x192xf32>
    %188 = vector.extract_strided_slice %181 {offsets = [0, 192], sizes = [16, 64], strides = [1, 1]} : vector<16x256xf32> to vector<16x64xf32>
    %189 = math.tanh %188 : vector<16x64xf32>
    %190 = vector.extract_strided_slice %187 {offsets = [0, 64], sizes = [16, 64], strides = [1, 1]} : vector<16x192xf32> to vector<16x64xf32>
    %191 = arith.mulf %190, %170 : vector<16x64xf32>
    %192 = vector.extract_strided_slice %187 {offsets = [0, 0], sizes = [16, 64], strides = [1, 1]} : vector<16x192xf32> to vector<16x64xf32>
    %193 = arith.mulf %192, %189 : vector<16x64xf32>
    %194 = arith.addf %191, %193 : vector<16x64xf32>
    %195 = vector.extract_strided_slice %187 {offsets = [0, 128], sizes = [16, 64], strides = [1, 1]} : vector<16x192xf32> to vector<16x64xf32>
    %196 = math.tanh %194 : vector<16x64xf32>
    %197 = arith.mulf %195, %196 : vector<16x64xf32>
    %c0_23 = arith.constant 0 : index
    %c0_24 = arith.constant 0 : index
    %198 = vector.load %arg7[%c0_23, %c0_24] : memref<308x64xf32, #tpu.memory_space<vmem>>, vector<8x64xf32>
    %199 = vector.extract_strided_slice %198 {offsets = [0, 0], sizes = [1, 64], strides = [1, 1]} : vector<8x64xf32> to vector<1x64xf32>
    %200 = vector.broadcast %199 : vector<1x64xf32> to vector<16x64xf32>
    %201 = arith.mulf %29, %200 : vector<16x64xf32>
    %202 = vector.extract_strided_slice %201 {offsets = [0, 0], sizes = [16, 32], strides = [1, 1]} : vector<16x64xf32> to vector<16x32xf32>
    %cst_25 = arith.constant dense<0.000000e+00> : vector<16xf32>
    %203 = vector.multi_reduction <add>, %202, %cst_25 [1] : vector<16x32xf32> to vector<16xf32>
    %204 = vector.shape_cast %203 : vector<16xf32> to vector<16x1xf32>
    %205 = vector.extract_strided_slice %201 {offsets = [0, 32], sizes = [16, 32], strides = [1, 1]} : vector<16x64xf32> to vector<16x32xf32>
    %cst_26 = arith.constant dense<0.000000e+00> : vector<16xf32>
    %206 = vector.multi_reduction <add>, %205, %cst_26 [1] : vector<16x32xf32> to vector<16xf32>
    %207 = vector.shape_cast %206 : vector<16xf32> to vector<16x1xf32>
    %208 = vector.extract_strided_slice %198 {offsets = [1, 0], sizes = [1, 64], strides = [1, 1]} : vector<8x64xf32> to vector<1x64xf32>
    %209 = vector.broadcast %208 : vector<1x64xf32> to vector<16x64xf32>
    %210 = arith.mulf %53, %209 : vector<16x64xf32>
    %211 = vector.extract_strided_slice %210 {offsets = [0, 0], sizes = [16, 32], strides = [1, 1]} : vector<16x64xf32> to vector<16x32xf32>
    %cst_27 = arith.constant dense<0.000000e+00> : vector<16xf32>
    %212 = vector.multi_reduction <add>, %211, %cst_27 [1] : vector<16x32xf32> to vector<16xf32>
    %213 = vector.shape_cast %212 : vector<16xf32> to vector<16x1xf32>
    %214 = vector.extract_strided_slice %210 {offsets = [0, 32], sizes = [16, 32], strides = [1, 1]} : vector<16x64xf32> to vector<16x32xf32>
    %cst_28 = arith.constant dense<0.000000e+00> : vector<16xf32>
    %215 = vector.multi_reduction <add>, %214, %cst_28 [1] : vector<16x32xf32> to vector<16xf32>
    %216 = vector.shape_cast %215 : vector<16xf32> to vector<16x1xf32>
    %217 = vector.extract_strided_slice %198 {offsets = [2, 0], sizes = [1, 64], strides = [1, 1]} : vector<8x64xf32> to vector<1x64xf32>
    %218 = vector.broadcast %217 : vector<1x64xf32> to vector<16x64xf32>
    %219 = arith.mulf %77, %218 : vector<16x64xf32>
    %220 = vector.extract_strided_slice %219 {offsets = [0, 0], sizes = [16, 32], strides = [1, 1]} : vector<16x64xf32> to vector<16x32xf32>
    %cst_29 = arith.constant dense<0.000000e+00> : vector<16xf32>
    %221 = vector.multi_reduction <add>, %220, %cst_29 [1] : vector<16x32xf32> to vector<16xf32>
    %222 = vector.shape_cast %221 : vector<16xf32> to vector<16x1xf32>
    %223 = vector.extract_strided_slice %219 {offsets = [0, 32], sizes = [16, 32], strides = [1, 1]} : vector<16x64xf32> to vector<16x32xf32>
    %cst_30 = arith.constant dense<0.000000e+00> : vector<16xf32>
    %224 = vector.multi_reduction <add>, %223, %cst_30 [1] : vector<16x32xf32> to vector<16xf32>
    %225 = vector.shape_cast %224 : vector<16xf32> to vector<16x1xf32>
    %226 = vector.extract_strided_slice %198 {offsets = [3, 0], sizes = [1, 64], strides = [1, 1]} : vector<8x64xf32> to vector<1x64xf32>
    %227 = vector.broadcast %226 : vector<1x64xf32> to vector<16x64xf32>
    %228 = arith.mulf %101, %227 : vector<16x64xf32>
    %229 = vector.extract_strided_slice %228 {offsets = [0, 0], sizes = [16, 32], strides = [1, 1]} : vector<16x64xf32> to vector<16x32xf32>
    %cst_31 = arith.constant dense<0.000000e+00> : vector<16xf32>
    %230 = vector.multi_reduction <add>, %229, %cst_31 [1] : vector<16x32xf32> to vector<16xf32>
    %231 = vector.shape_cast %230 : vector<16xf32> to vector<16x1xf32>
    %232 = vector.extract_strided_slice %228 {offsets = [0, 32], sizes = [16, 32], strides = [1, 1]} : vector<16x64xf32> to vector<16x32xf32>
    %cst_32 = arith.constant dense<0.000000e+00> : vector<16xf32>
    %233 = vector.multi_reduction <add>, %232, %cst_32 [1] : vector<16x32xf32> to vector<16xf32>
    %234 = vector.shape_cast %233 : vector<16xf32> to vector<16x1xf32>
    %235 = vector.extract_strided_slice %198 {offsets = [4, 0], sizes = [1, 64], strides = [1, 1]} : vector<8x64xf32> to vector<1x64xf32>
    %236 = vector.broadcast %235 : vector<1x64xf32> to vector<16x64xf32>
    %237 = arith.mulf %125, %236 : vector<16x64xf32>
    %238 = vector.extract_strided_slice %237 {offsets = [0, 0], sizes = [16, 32], strides = [1, 1]} : vector<16x64xf32> to vector<16x32xf32>
    %cst_33 = arith.constant dense<0.000000e+00> : vector<16xf32>
    %239 = vector.multi_reduction <add>, %238, %cst_33 [1] : vector<16x32xf32> to vector<16xf32>
    %240 = vector.shape_cast %239 : vector<16xf32> to vector<16x1xf32>
    %241 = vector.extract_strided_slice %237 {offsets = [0, 32], sizes = [16, 32], strides = [1, 1]} : vector<16x64xf32> to vector<16x32xf32>
    %cst_34 = arith.constant dense<0.000000e+00> : vector<16xf32>
    %242 = vector.multi_reduction <add>, %241, %cst_34 [1] : vector<16x32xf32> to vector<16xf32>
    %243 = vector.shape_cast %242 : vector<16xf32> to vector<16x1xf32>
    %244 = vector.extract_strided_slice %198 {offsets = [5, 0], sizes = [1, 64], strides = [1, 1]} : vector<8x64xf32> to vector<1x64xf32>
    %245 = vector.broadcast %244 : vector<1x64xf32> to vector<16x64xf32>
    %246 = arith.mulf %149, %245 : vector<16x64xf32>
    %247 = vector.extract_strided_slice %246 {offsets = [0, 0], sizes = [16, 32], strides = [1, 1]} : vector<16x64xf32> to vector<16x32xf32>
    %cst_35 = arith.constant dense<0.000000e+00> : vector<16xf32>
    %248 = vector.multi_reduction <add>, %247, %cst_35 [1] : vector<16x32xf32> to vector<16xf32>
    %249 = vector.shape_cast %248 : vector<16xf32> to vector<16x1xf32>
    %250 = vector.extract_strided_slice %246 {offsets = [0, 32], sizes = [16, 32], strides = [1, 1]} : vector<16x64xf32> to vector<16x32xf32>
    %cst_36 = arith.constant dense<0.000000e+00> : vector<16xf32>
    %251 = vector.multi_reduction <add>, %250, %cst_36 [1] : vector<16x32xf32> to vector<16xf32>
    %252 = vector.shape_cast %251 : vector<16xf32> to vector<16x1xf32>
    %253 = vector.extract_strided_slice %198 {offsets = [6, 0], sizes = [1, 64], strides = [1, 1]} : vector<8x64xf32> to vector<1x64xf32>
    %254 = vector.broadcast %253 : vector<1x64xf32> to vector<16x64xf32>
    %255 = arith.mulf %173, %254 : vector<16x64xf32>
    %256 = vector.extract_strided_slice %255 {offsets = [0, 0], sizes = [16, 32], strides = [1, 1]} : vector<16x64xf32> to vector<16x32xf32>
    %cst_37 = arith.constant dense<0.000000e+00> : vector<16xf32>
    %257 = vector.multi_reduction <add>, %256, %cst_37 [1] : vector<16x32xf32> to vector<16xf32>
    %258 = vector.shape_cast %257 : vector<16xf32> to vector<16x1xf32>
    %259 = vector.extract_strided_slice %255 {offsets = [0, 32], sizes = [16, 32], strides = [1, 1]} : vector<16x64xf32> to vector<16x32xf32>
    %cst_38 = arith.constant dense<0.000000e+00> : vector<16xf32>
    %260 = vector.multi_reduction <add>, %259, %cst_38 [1] : vector<16x32xf32> to vector<16xf32>
    %261 = vector.shape_cast %260 : vector<16xf32> to vector<16x1xf32>
    %262 = vector.extract_strided_slice %198 {offsets = [7, 0], sizes = [1, 64], strides = [1, 1]} : vector<8x64xf32> to vector<1x64xf32>
    %263 = vector.broadcast %262 : vector<1x64xf32> to vector<16x64xf32>
    %264 = arith.mulf %197, %263 : vector<16x64xf32>
    %265 = vector.extract_strided_slice %264 {offsets = [0, 0], sizes = [16, 32], strides = [1, 1]} : vector<16x64xf32> to vector<16x32xf32>
    %cst_39 = arith.constant dense<0.000000e+00> : vector<16xf32>
    %266 = vector.multi_reduction <add>, %265, %cst_39 [1] : vector<16x32xf32> to vector<16xf32>
    %267 = vector.shape_cast %266 : vector<16xf32> to vector<16x1xf32>
    %268 = vector.extract_strided_slice %264 {offsets = [0, 32], sizes = [16, 32], strides = [1, 1]} : vector<16x64xf32> to vector<16x32xf32>
    %cst_40 = arith.constant dense<0.000000e+00> : vector<16xf32>
    %269 = vector.multi_reduction <add>, %268, %cst_40 [1] : vector<16x32xf32> to vector<16xf32>
    %270 = vector.shape_cast %269 : vector<16xf32> to vector<16x1xf32>
    %271 = arith.maximumf %204, %213 : vector<16x1xf32>
    %272 = arith.maximumf %207, %216 : vector<16x1xf32>
    %273 = arith.maximumf %271, %222 : vector<16x1xf32>
    %274 = arith.maximumf %272, %225 : vector<16x1xf32>
    %275 = arith.maximumf %273, %231 : vector<16x1xf32>
    %276 = arith.maximumf %274, %234 : vector<16x1xf32>
    %277 = arith.maximumf %275, %240 : vector<16x1xf32>
    %278 = arith.maximumf %276, %243 : vector<16x1xf32>
    %279 = arith.maximumf %277, %249 : vector<16x1xf32>
    %280 = arith.maximumf %278, %252 : vector<16x1xf32>
    %281 = arith.maximumf %279, %258 : vector<16x1xf32>
    %282 = arith.maximumf %280, %261 : vector<16x1xf32>
    %283 = arith.maximumf %281, %267 : vector<16x1xf32>
    %284 = arith.maximumf %282, %270 : vector<16x1xf32>
    %285 = arith.subf %204, %283 : vector<16x1xf32>
    %286 = math.exp %285 : vector<16x1xf32>
    %287 = arith.subf %213, %283 : vector<16x1xf32>
    %288 = math.exp %287 : vector<16x1xf32>
    %289 = arith.subf %222, %283 : vector<16x1xf32>
    %290 = math.exp %289 : vector<16x1xf32>
    %291 = arith.subf %231, %283 : vector<16x1xf32>
    %292 = math.exp %291 : vector<16x1xf32>
    %293 = arith.subf %240, %283 : vector<16x1xf32>
    %294 = math.exp %293 : vector<16x1xf32>
    %295 = arith.subf %249, %283 : vector<16x1xf32>
    %296 = math.exp %295 : vector<16x1xf32>
    %297 = arith.subf %258, %283 : vector<16x1xf32>
    %298 = math.exp %297 : vector<16x1xf32>
    %299 = arith.subf %267, %283 : vector<16x1xf32>
    %300 = math.exp %299 : vector<16x1xf32>
    %301 = arith.subf %207, %284 : vector<16x1xf32>
    %302 = math.exp %301 : vector<16x1xf32>
    %303 = arith.subf %216, %284 : vector<16x1xf32>
    %304 = math.exp %303 : vector<16x1xf32>
    %305 = arith.subf %225, %284 : vector<16x1xf32>
    %306 = math.exp %305 : vector<16x1xf32>
    %307 = arith.subf %234, %284 : vector<16x1xf32>
    %308 = math.exp %307 : vector<16x1xf32>
    %309 = arith.subf %243, %284 : vector<16x1xf32>
    %310 = math.exp %309 : vector<16x1xf32>
    %311 = arith.subf %252, %284 : vector<16x1xf32>
    %312 = math.exp %311 : vector<16x1xf32>
    %313 = arith.subf %261, %284 : vector<16x1xf32>
    %314 = math.exp %313 : vector<16x1xf32>
    %315 = arith.subf %270, %284 : vector<16x1xf32>
    %316 = math.exp %315 : vector<16x1xf32>
    %317 = arith.addf %286, %288 : vector<16x1xf32>
    %318 = arith.addf %302, %304 : vector<16x1xf32>
    %319 = arith.addf %317, %290 : vector<16x1xf32>
    %320 = arith.addf %318, %306 : vector<16x1xf32>
    %321 = arith.addf %319, %292 : vector<16x1xf32>
    %322 = arith.addf %320, %308 : vector<16x1xf32>
    %323 = arith.addf %321, %294 : vector<16x1xf32>
    %324 = arith.addf %322, %310 : vector<16x1xf32>
    %325 = arith.addf %323, %296 : vector<16x1xf32>
    %326 = arith.addf %324, %312 : vector<16x1xf32>
    %327 = arith.addf %325, %298 : vector<16x1xf32>
    %328 = arith.addf %326, %314 : vector<16x1xf32>
    %329 = arith.addf %327, %300 : vector<16x1xf32>
    %330 = arith.addf %328, %316 : vector<16x1xf32>
    %cst_41 = arith.constant 0.000000e+00 : f32
    %331 = vector.broadcast %cst_41 : f32 to vector<16x32xf32>
    %cst_42 = arith.constant 0.000000e+00 : f32
    %332 = vector.broadcast %cst_42 : f32 to vector<16x32xf32>
    %333 = vector.extract_strided_slice %29 {offsets = [0, 0], sizes = [16, 32], strides = [1, 1]} : vector<16x64xf32> to vector<16x32xf32>
    %334 = vector.broadcast %286 : vector<16x1xf32> to vector<16x32xf32>
    %335 = arith.mulf %334, %333 : vector<16x32xf32>
    %336 = arith.addf %331, %335 : vector<16x32xf32>
    %337 = vector.extract_strided_slice %29 {offsets = [0, 32], sizes = [16, 32], strides = [1, 1]} : vector<16x64xf32> to vector<16x32xf32>
    %338 = vector.broadcast %302 : vector<16x1xf32> to vector<16x32xf32>
    %339 = arith.mulf %338, %337 : vector<16x32xf32>
    %340 = arith.addf %332, %339 : vector<16x32xf32>
    %341 = vector.extract_strided_slice %53 {offsets = [0, 0], sizes = [16, 32], strides = [1, 1]} : vector<16x64xf32> to vector<16x32xf32>
    %342 = vector.broadcast %288 : vector<16x1xf32> to vector<16x32xf32>
    %343 = arith.mulf %342, %341 : vector<16x32xf32>
    %344 = arith.addf %336, %343 : vector<16x32xf32>
    %345 = vector.extract_strided_slice %53 {offsets = [0, 32], sizes = [16, 32], strides = [1, 1]} : vector<16x64xf32> to vector<16x32xf32>
    %346 = vector.broadcast %304 : vector<16x1xf32> to vector<16x32xf32>
    %347 = arith.mulf %346, %345 : vector<16x32xf32>
    %348 = arith.addf %340, %347 : vector<16x32xf32>
    %349 = vector.extract_strided_slice %77 {offsets = [0, 0], sizes = [16, 32], strides = [1, 1]} : vector<16x64xf32> to vector<16x32xf32>
    %350 = vector.broadcast %290 : vector<16x1xf32> to vector<16x32xf32>
    %351 = arith.mulf %350, %349 : vector<16x32xf32>
    %352 = arith.addf %344, %351 : vector<16x32xf32>
    %353 = vector.extract_strided_slice %77 {offsets = [0, 32], sizes = [16, 32], strides = [1, 1]} : vector<16x64xf32> to vector<16x32xf32>
    %354 = vector.broadcast %306 : vector<16x1xf32> to vector<16x32xf32>
    %355 = arith.mulf %354, %353 : vector<16x32xf32>
    %356 = arith.addf %348, %355 : vector<16x32xf32>
    %357 = vector.extract_strided_slice %101 {offsets = [0, 0], sizes = [16, 32], strides = [1, 1]} : vector<16x64xf32> to vector<16x32xf32>
    %358 = vector.broadcast %292 : vector<16x1xf32> to vector<16x32xf32>
    %359 = arith.mulf %358, %357 : vector<16x32xf32>
    %360 = arith.addf %352, %359 : vector<16x32xf32>
    %361 = vector.extract_strided_slice %101 {offsets = [0, 32], sizes = [16, 32], strides = [1, 1]} : vector<16x64xf32> to vector<16x32xf32>
    %362 = vector.broadcast %308 : vector<16x1xf32> to vector<16x32xf32>
    %363 = arith.mulf %362, %361 : vector<16x32xf32>
    %364 = arith.addf %356, %363 : vector<16x32xf32>
    %365 = vector.extract_strided_slice %125 {offsets = [0, 0], sizes = [16, 32], strides = [1, 1]} : vector<16x64xf32> to vector<16x32xf32>
    %366 = vector.broadcast %294 : vector<16x1xf32> to vector<16x32xf32>
    %367 = arith.mulf %366, %365 : vector<16x32xf32>
    %368 = arith.addf %360, %367 : vector<16x32xf32>
    %369 = vector.extract_strided_slice %125 {offsets = [0, 32], sizes = [16, 32], strides = [1, 1]} : vector<16x64xf32> to vector<16x32xf32>
    %370 = vector.broadcast %310 : vector<16x1xf32> to vector<16x32xf32>
    %371 = arith.mulf %370, %369 : vector<16x32xf32>
    %372 = arith.addf %364, %371 : vector<16x32xf32>
    %373 = vector.extract_strided_slice %149 {offsets = [0, 0], sizes = [16, 32], strides = [1, 1]} : vector<16x64xf32> to vector<16x32xf32>
    %374 = vector.broadcast %296 : vector<16x1xf32> to vector<16x32xf32>
    %375 = arith.mulf %374, %373 : vector<16x32xf32>
    %376 = arith.addf %368, %375 : vector<16x32xf32>
    %377 = vector.extract_strided_slice %149 {offsets = [0, 32], sizes = [16, 32], strides = [1, 1]} : vector<16x64xf32> to vector<16x32xf32>
    %378 = vector.broadcast %312 : vector<16x1xf32> to vector<16x32xf32>
    %379 = arith.mulf %378, %377 : vector<16x32xf32>
    %380 = arith.addf %372, %379 : vector<16x32xf32>
    %381 = vector.extract_strided_slice %173 {offsets = [0, 0], sizes = [16, 32], strides = [1, 1]} : vector<16x64xf32> to vector<16x32xf32>
    %382 = vector.broadcast %298 : vector<16x1xf32> to vector<16x32xf32>
    %383 = arith.mulf %382, %381 : vector<16x32xf32>
    %384 = arith.addf %376, %383 : vector<16x32xf32>
    %385 = vector.extract_strided_slice %173 {offsets = [0, 32], sizes = [16, 32], strides = [1, 1]} : vector<16x64xf32> to vector<16x32xf32>
    %386 = vector.broadcast %314 : vector<16x1xf32> to vector<16x32xf32>
    %387 = arith.mulf %386, %385 : vector<16x32xf32>
    %388 = arith.addf %380, %387 : vector<16x32xf32>
    %389 = vector.extract_strided_slice %197 {offsets = [0, 0], sizes = [16, 32], strides = [1, 1]} : vector<16x64xf32> to vector<16x32xf32>
    %390 = vector.broadcast %300 : vector<16x1xf32> to vector<16x32xf32>
    %391 = arith.mulf %390, %389 : vector<16x32xf32>
    %392 = arith.addf %384, %391 : vector<16x32xf32>
    %393 = vector.extract_strided_slice %197 {offsets = [0, 32], sizes = [16, 32], strides = [1, 1]} : vector<16x64xf32> to vector<16x32xf32>
    %394 = vector.broadcast %316 : vector<16x1xf32> to vector<16x32xf32>
    %395 = arith.mulf %394, %393 : vector<16x32xf32>
    %396 = arith.addf %388, %395 : vector<16x32xf32>
    %397 = vector.broadcast %329 : vector<16x1xf32> to vector<16x32xf32>
    %398 = arith.divf %392, %397 : vector<16x32xf32>
    %399 = vector.broadcast %330 : vector<16x1xf32> to vector<16x32xf32>
    %400 = arith.divf %396, %399 : vector<16x32xf32>
    %401 = tpu.concatenate %398, %400 in 1 : vector<16x32xf32>, vector<16x32xf32> -> vector<16x64xf32>
    %c8 = arith.constant 8 : index
    %c0_43 = arith.constant 0 : index
    %402 = vector.load %arg7[%c8, %c0_43] : memref<308x64xf32, #tpu.memory_space<vmem>>, vector<64x64xf32>
    %c304 = arith.constant 304 : index
    %c0_44 = arith.constant 0 : index
    %403 = vector.load %arg7[%c304, %c0_44] : memref<308x64xf32, #tpu.memory_space<vmem>>, vector<1x64xf32>
    %cst_45 = arith.constant dense<0.000000e+00> : vector<16x64xf32>
    %404 = tpu.matmul %401, %402, %cst_45 {dimension_numbers = #tpu.dot_dimension_numbers<[1], [0], [0], [1], [0, 0, 1, 1], [], []>} : vector<16x64xf32>, vector<64x64xf32>, vector<16x64xf32> -> vector<16x64xf32>
    %405 = vector.broadcast %403 : vector<1x64xf32> to vector<16x64xf32>
    %406 = arith.addf %404, %405 : vector<16x64xf32>
    %cst_46 = arith.constant 0.000000e+00 : f32
    %407 = vector.broadcast %cst_46 : f32 to vector<16x64xf32>
    %408 = arith.maximumf %406, %407 : vector<16x64xf32>
    %c0_47 = arith.constant 0 : index
    %c0_48 = arith.constant 0 : index
    %409 = vector.load %arg1[%c0_47, %c0_48] : memref<16x4xf32, #tpu.memory_space<vmem>>, vector<16x4xf32>
    %410 = vector.extract_strided_slice %408 {offsets = [0, 0], sizes = [16, 32], strides = [1, 1]} : vector<16x64xf32> to vector<16x32xf32>
    %411 = vector.extract_strided_slice %408 {offsets = [0, 32], sizes = [16, 32], strides = [1, 1]} : vector<16x64xf32> to vector<16x32xf32>
    %412 = tpu.concatenate %410, %409, %411, %409 in 1 : vector<16x32xf32>, vector<16x4xf32>, vector<16x32xf32>, vector<16x4xf32> -> vector<16x72xf32>
    %c0_49 = arith.constant 0 : index
    %c0_50 = arith.constant 0 : index
    %413 = vector.load %arg4[%c0_49, %c0_50] : memref<16x72xf32, #tpu.memory_space<vmem>>, vector<16x72xf32>
    %414 = arith.mulf %412, %413 : vector<16x72xf32>
    %c0_51 = arith.constant 0 : index
    %c0_52 = arith.constant 0 : index
    %415 = vector.load %arg2[%c0_51, %c0_52] : memref<16x16xf32, #tpu.memory_space<vmem>>, vector<16x16xf32>
    %c72 = arith.constant 72 : index
    %c0_53 = arith.constant 0 : index
    %416 = vector.load %arg7[%c72, %c0_53] : memref<308x64xf32, #tpu.memory_space<vmem>>, vector<72x64xf32>
    %c305 = arith.constant 305 : index
    %c0_54 = arith.constant 0 : index
    %417 = vector.load %arg7[%c305, %c0_54] : memref<308x64xf32, #tpu.memory_space<vmem>>, vector<1x64xf32>
    %cst_55 = arith.constant dense<0.000000e+00> : vector<16x64xf32>
    %418 = tpu.matmul %414, %416, %cst_55 {dimension_numbers = #tpu.dot_dimension_numbers<[1], [0], [0], [1], [0, 0, 1, 1], [], []>} : vector<16x72xf32>, vector<72x64xf32>, vector<16x64xf32> -> vector<16x64xf32>
    %cst_56 = arith.constant dense<0.000000e+00> : vector<16x64xf32>
    %419 = tpu.matmul %415, %418, %cst_56 {dimension_numbers = #tpu.dot_dimension_numbers<[1], [0], [0], [1], [0, 0, 1, 1], [], []>} : vector<16x16xf32>, vector<16x64xf32>, vector<16x64xf32> -> vector<16x64xf32>
    %420 = vector.broadcast %417 : vector<1x64xf32> to vector<16x64xf32>
    %421 = arith.addf %419, %420 : vector<16x64xf32>
    %c0_57 = arith.constant 0 : index
    %c0_58 = arith.constant 0 : index
    %422 = vector.load %arg5[%c0_57, %c0_58] : memref<16x64xf32, #tpu.memory_space<vmem>>, vector<16x64xf32>
    %423 = arith.mulf %421, %422 : vector<16x64xf32>
    %c144 = arith.constant 144 : index
    %c0_59 = arith.constant 0 : index
    %424 = vector.load %arg7[%c144, %c0_59] : memref<308x64xf32, #tpu.memory_space<vmem>>, vector<64x64xf32>
    %c306 = arith.constant 306 : index
    %c0_60 = arith.constant 0 : index
    %425 = vector.load %arg7[%c306, %c0_60] : memref<308x64xf32, #tpu.memory_space<vmem>>, vector<1x64xf32>
    %cst_61 = arith.constant dense<0.000000e+00> : vector<16x64xf32>
    %426 = tpu.matmul %423, %424, %cst_61 {dimension_numbers = #tpu.dot_dimension_numbers<[1], [0], [0], [1], [0, 0, 1, 1], [], []>} : vector<16x64xf32>, vector<64x64xf32>, vector<16x64xf32> -> vector<16x64xf32>
    %cst_62 = arith.constant dense<0.000000e+00> : vector<16x64xf32>
    %427 = tpu.matmul %415, %426, %cst_62 {dimension_numbers = #tpu.dot_dimension_numbers<[1], [0], [0], [1], [0, 0, 1, 1], [], []>} : vector<16x16xf32>, vector<16x64xf32>, vector<16x64xf32> -> vector<16x64xf32>
    %428 = vector.broadcast %425 : vector<1x64xf32> to vector<16x64xf32>
    %429 = arith.addf %427, %428 : vector<16x64xf32>
    %c0_63 = arith.constant 0 : index
    %c0_64 = arith.constant 0 : index
    %430 = vector.load %arg3[%c0_63, %c0_64] : memref<16x16xf32, #tpu.memory_space<vmem>>, vector<16x16xf32>
    %431 = vector.extract_strided_slice %429 {offsets = [0, 32], sizes = [16, 32], strides = [1, 1]} : vector<16x64xf32> to vector<16x32xf32>
    %cst_65 = arith.constant dense<0.000000e+00> : vector<16x32xf32>
    %432 = tpu.matmul %430, %431, %cst_65 {dimension_numbers = #tpu.dot_dimension_numbers<[1], [0], [0], [1], [0, 0, 1, 1], [], []>} : vector<16x16xf32>, vector<16x32xf32>, vector<16x32xf32> -> vector<16x32xf32>
    %433 = tpu.concatenate %429, %432 in 1 : vector<16x64xf32>, vector<16x32xf32> -> vector<16x96xf32>
    %c208 = arith.constant 208 : index
    %c0_66 = arith.constant 0 : index
    %434 = vector.load %arg7[%c208, %c0_66] : memref<308x64xf32, #tpu.memory_space<vmem>>, vector<96x64xf32>
    %c307 = arith.constant 307 : index
    %c0_67 = arith.constant 0 : index
    %435 = vector.load %arg7[%c307, %c0_67] : memref<308x64xf32, #tpu.memory_space<vmem>>, vector<1x64xf32>
    %cst_68 = arith.constant dense<0.000000e+00> : vector<16x64xf32>
    %436 = tpu.matmul %433, %434, %cst_68 {dimension_numbers = #tpu.dot_dimension_numbers<[1], [0], [0], [1], [0, 0, 1, 1], [], []>} : vector<16x96xf32>, vector<96x64xf32>, vector<16x64xf32> -> vector<16x64xf32>
    %437 = vector.broadcast %435 : vector<1x64xf32> to vector<16x64xf32>
    %438 = arith.addf %436, %437 : vector<16x64xf32>
    %cst_69 = arith.constant 0.000000e+00 : f32
    %439 = vector.broadcast %cst_69 : f32 to vector<16x64xf32>
    %440 = arith.maximumf %438, %439 : vector<16x64xf32>
    %441 = tpu.concatenate %429, %440 in 1 : vector<16x64xf32>, vector<16x64xf32> -> vector<16x128xf32>
    %c0_70 = arith.constant 0 : index
    %c0_71 = arith.constant 0 : index
    %442 = vector.load %arg9[%c0_70, %c0_71] : memref<16x128xf32, #tpu.memory_space<vmem>>, vector<16x128xf32>
    tpu.vector_store %arg9[%c0_70, %c0_71], %441 {strides = array<i32>} : memref<16x128xf32, #tpu.memory_space<vmem>>, vector<16x128xf32>,
    return
  }
}

</mosaic_0001>

<bundles_post_ra>
// kernel: trendspot_forward.3
= control target key start
LH: loop header
LB: loop body
LE: loop exit
PB: predicated region body
PF: predicated region fallthrough
CT: control target
= control target key end

     0   :  { %14 = vsyncpa [#allocation3], 0  ;;  %s3097_s30 = smov [#allocation2]   ;;  %s4272_s0 = inlined_call_operand.vmem [shape: f32[16,8], index: 0, kind: input, shape index: {}]   ;;  %s4273_s1 = inlined_call_operand.vmem [shape: f32[16,4], index: 1, kind: input, shape index: {}]   ;;  %s4274_s2 = inlined_call_operand.hbm [shape: f32[16,16], index: 2, kind: input, shape index: {}]   ;;  %s4275_s3 = inlined_call_operand.vmem [shape: f32[16,16], index: 3, kind: input, shape index: {}]   ;;  %s4276_s4 = inlined_call_operand.vmem [shape: f32[16,72], index: 4, kind: input, shape index: {}]   ;;  %s4277_s5 = inlined_call_operand.vmem [shape: f32[16,64], index: 5, kind: input, shape index: {}]   ;;  %s4278_s6 = inlined_call_operand.vmem [shape: f32[64,256], index: 6, kind: input, shape index: {}]   ;;  %s4279_s7 = inlined_call_operand.vmem [shape: f32[308,64], index: 7, kind: input, shape index: {}]   ;;  %s4280_s8 = inlined_call_operand.vmem [shape: f32[2,256], index: 8, kind: input, shape index: {}]   ;;  %s4281_s9 = inlined_call_operand.vmem [shape: f32[16,128], index: 9, kind: output, shape index: {}]  }
   0x1   :  { %s24_s10 = sshll.u32 %s3097_s30, 4  ;;  %s25_s10 = int_to_ptr.vmem [resolvable:$true] %s24_s10 }
   0x2   :  { %s3083_s11 = scalar_lea.vmem %s25_s10, 256  ;;  %p3088_p1 = scmp.lt.s32.totalorder %s25_s10, %s25_s10 }
   0x3   :  { %p3084_p0 = scmp.ne.s32.totalorder %s25_s10, %s3083_s11  ;;  %p3089_p2 = scmp.lt.s32.totalorder %s3083_s11, %s3083_s11 }
   0x5   :  { %p3090_p3 = por %p3089_p2, %p3088_p1 }
   0x7   :  { %p3091_p4 = pnand %p3090_p3, %p3084_p0 }
   0x9   :  { %3094 = shalt.err (!%p3091_p4)
}
   0xa   :  { %s3098_s12 = smov 128   ;;  %s3099_s13 = smov 8  }
   0xb   :  { %30 = dma.hbm_to_vmem [thread:$0]  %s4274_s2, 256, %s25_s10, [#allocation3], %s3098_s12, %s3098_s12, %s3099_s13  }
   0xc   :  { %3095 = dma.done.wait [#allocation3], 256  }
   0xd   :  { %3096 = vsyncadd [#allocation3], 4294967040  ;;  %v3100_v0 = vmov 0.0   ;;  %v3101_v1 = vmov 0   ;;  %v3172_v2 = vld [vmem:[%s4278_s6 + $0x78] sm:$0xff]  ;;  %v3177_v3 = vld [vmem:[%s4278_s6 + $0x70] sm:$0xff]  ;;  %v78_v20 = vlaneseq }
   0xe   :  { %160 = vmatprep.mubr.f32.mxu0 %v3100_v0  ;;  %2779 = vset.pattern.permute.xlu0 %v3101_v1  ;;  %v3182_v4 = vld [vmem:[%s4278_s6 + $0x68] sm:$0xff]  ;;  %v3188_v5 = vld [vmem:[%s4278_s6 + $0x60] sm:$0xff]  ;;  %v3195_v6 = vld [vmem:[%s4278_s6 + $0x58] sm:$0xff]  ;;  %vm92_vm0 = vcmask 523264   ;;  %s3110_s23 = smov 96   ;;  %vm1400_vm1 = vcmask 261120  }
   0xf   :  { %334 = vmatprep.mubr.f32.mxu1 %v3100_v0  ;;  %112 = vmatprep.subr.mxu0 %v3172_v2  ;;  %v3202_v7 = vld [vmem:[%s4278_s6 + $0x50] sm:$0xff]  ;;  %v3209_v8 = vld [vmem:[%s4278_s6 + $0x48] sm:$0xff]  ;;  %v3216_v9 = vld [vmem:[%s4278_s6 + $0x40] sm:$0xff]  ;;  %v3315_v21 = vshrl.u32 %v78_v20, 7  ;;  %s3111_s21 = smov 32   ;;  %s3113_s2 = smov 68  }
  0x10   :  { %286 = vmatprep.subr.mxu1 %v3172_v2  ;;  %113 = vmatpush1.msra.mxu0 %v3177_v3  ;;  %v3221_v10 = vld [vmem:[%s4272_s0] sm:$0xff]  ;;  %v3228_v11 = vld [vmem:[%s4278_s6 + $0x38] sm:$0xff]  ;;  %v3235_v12 = vld [vmem:[%s4278_s6 + $0x30] sm:$0xff]  ;;  %vm1951_vm2 = vcmask 293888   ;;  %vm1954_vm3 = vcmask 556032   ;;  %vm1973_vm4 = vcmask 588800  }
  0x11   :  { %287 = vmatpush1.msra.mxu1 %v3177_v3  ;;  %114 = vmatprep.subr.mxu0 %v3182_v4  ;;  %v3240_v13 = vld [vmem:[%s4272_s0 + $0x8] sm:$0xff]  ;;  %v3254_v15 = vld [vmem:[%s4278_s6 + $0x20] sm:$0xff]  ;;  %v3261_v16 = vld [vmem:[%s4278_s6 + $0x18] sm:$0xff]  ;;  %v3318_v22 = vsub.s32 1, %v3315_v21  ;;  %v3339_v41 = vsub.s32 0, %v3315_v21  ;;  %vm2059_vm5 = vcmask 130048  }
  0x12   :  { %288 = vmatprep.subr.mxu1 %v3182_v4  ;;  %115 = vmatpush1.msra.mxu0 %v3188_v5  ;;  %v3247_v14 = vld [vmem:[%s4278_s6 + $0x28] sm:$0xff]  ;;  %v3268_v17 = vld [vmem:[%s4278_s6 + $0x10] sm:$0xff]  ;;  %v3282_v19 = vld [vmem:[%s4278_s6] sm:$0xff]  ;;  %vm2432_vm6 = vcmask 785408  }
  0x13   :  { %289 = vmatpush1.msra.mxu1 %v3188_v5  ;;  %116 = vmatprep.subr.mxu0 %v3195_v6  ;;  %v3275_v18 = vld [vmem:[%s4278_s6 + $0x8] sm:$0xff]  ;;  %v48_v23 = vld [vmem:[%s4280_s8] ss:$2 sm:$0x3] }
  0x14   :  { %290 = vmatprep.subr.mxu1 %v3195_v6  ;;  %117 = vmatpush1.msra.mxu0 %v3202_v7  ;;  %v3324_v24 = vrot.slane %v48_v23, %v3318_v22  ;;  %v2533_v27 = vld [vmem:[%s4280_s8 + $0x1] ss:$2 sm:$0x3]  ;;  %s3102_s8 = smov 64   ;;  %v3342_v42 = vrot.slane %v48_v23, %v3339_v41 }
  0x15   :  { %69 = vperm.xlu0 %2779, %v3221_v10   ;;  %118 = vmatprep.subr.mxu0 %v3209_v8  ;;  %v3331_v29 = vrot.slane %v2533_v27, %v3318_v22  ;;  %v3346_v45 = vrot.slane %v2533_v27, %v3339_v41 }
  0x16   :  { %291 = vmatpush1.msra.mxu1 %v3202_v7  ;;  %119 = vmatpush1.msra.mxu0 %v3216_v9 }
  0x17   :  { %292 = vmatprep.subr.mxu1 %v3209_v8  ;;  %120 = vmatprep.subr.mxu0 %v3228_v11 }
  0x18   :  { %293 = vmatpush1.msra.mxu1 %v3216_v9  ;;  %121 = vmatpush1.msra.mxu0 %v3235_v12 }
  0x19   :  { %74 = vperm.xlu0 %2779, %v3240_v13   ;;  %122 = vmatprep.subr.mxu0 %v3247_v14 }
  0x1a   :  { %294 = vmatprep.subr.mxu1 %v3228_v11  ;;  %123 = vmatpush1.msra.mxu0 %v3254_v15 }
  0x1b   :  { %295 = vmatpush1.msra.mxu1 %v3235_v12  ;;  %124 = vmatprep.subr.mxu0 %v3261_v16 }
  0x1c   :  { %296 = vmatprep.subr.mxu1 %v3247_v14  ;;  %125 = vmatpush1.msra.mxu0 %v3268_v17 }
  0x1d   :  { %297 = vmatpush1.msra.mxu1 %v3254_v15  ;;  %126 = vmatprep.subr.mxu0 %v3275_v18 }
  0x1e   :  { %298 = vmatprep.subr.mxu1 %v3261_v16  ;;  %127 = vmatpush1.msra.mxu0 %v3282_v19 }
  0x1f   :  { %299 = vmatpush1.msra.mxu1 %v3268_v17  ;;  %161 = vmatmul.mubr.f32.vlgmr.msra.gmra.mxu0 %v3100_v0 }
  0x20   :  { %300 = vmatprep.subr.mxu1 %v3275_v18  ;;  %166 = vmatprep.mubr.f32.mxu0 %v3100_v0 }
  0x21   :  { %301 = vmatpush1.msra.mxu1 %v3282_v19  ;;  %449 = vmatprep.subr.mxu0 %v3172_v2 }
  0x22   :  { %612 = vmatprep.subr.mxu1 %v3172_v2  ;;  %450 = vmatpush1.msra.mxu0 %v3177_v3 }
  0x23   :  { %167 = vmatmul.mubr.f32.gmra.mxu0 %v3100_v0  ;;  %451 = vmatprep.subr.mxu0 %v3182_v4 }
  0x24   :  { %452 = vmatpush1.msra.mxu0 %v3188_v5  ;;  %497 = vmatprep.mubr.f32.mxu0 %v3100_v0 }
  0x25   :  { %453 = vmatprep.subr.mxu0 %v3195_v6 }
  0x26   :  { %454 = vmatpush1.msra.mxu0 %v3202_v7 }
  0x27   :  { %455 = vmatprep.subr.mxu0 %v3209_v8 }
  0x28   :  { %456 = vmatpush1.msra.mxu0 %v3216_v9 }
  0x29   :  { %457 = vmatprep.subr.mxu0 %v3228_v11 }
  0x2a   :  { %458 = vmatpush1.msra.mxu0 %v3235_v12 }
  0x2b   :  { %459 = vmatprep.subr.mxu0 %v3247_v14 }
  0x2c   :  { %460 = vmatpush1.msra.mxu0 %v3254_v15 }
  0x2d   :  { %461 = vmatprep.subr.mxu0 %v3261_v16 }
  0x2e   :  { %462 = vmatpush1.msra.mxu0 %v3268_v17 }
  0x2f   :  { %463 = vmatprep.subr.mxu0 %v3275_v18 }
  0x30   :  { %464 = vmatpush1.msra.mxu0 %v3282_v19 }
  0x31   :  { %775 = vmatprep.subr.mxu0 %v3172_v2 }
  0x90   :  { %v70_v25 = vpop.permute.xlu0 %69 }
  0x91   :  { %v89_v26 = vmul.f32 %v3324_v24, %v70_v25  ;;  %v88_v43 = vmul.f32 %v3342_v42, %v70_v25 }
  0x94   :  { %v75_v30 = vpop.permute.xlu0 %74 }
  0x95   :  { %v91_v35 = vmul.f32 %v3324_v24, %v75_v30  ;;  %v90_v46 = vmul.f32 %v3342_v42, %v75_v30 }
  0xdf   :  { %v162_v28 = vpop.f32.mrf.mxu0 }
  0xe0   :  { %v173_v44 = vadd.f32 %v162_v28, %v88_v43 }
  0xe1   :  { %v164_v31 = vpop.f32.mrf.mxu0 }
  0xe2   :  { %v174_v32 = vadd.f32 %v164_v31, %v89_v26  ;;  %v188_v47 = vadd.f32 %v3346_v45, %v173_v44  ;;  %v3103_v26 = vmov 1  }
  0xe3   :  { %v168_v33 = vpop.f32.mrf.mxu0  ;;  %2780 = vset.pattern.permute.xlu0 %v3103_v26  ;;  %2781 = vset.pattern.permute.xlu1 %v3103_v26 }
  0xe4   :  { %v189_v34 = vadd.f32 %v3331_v29, %v174_v32  ;;  %v175_v48 = vadd.f32 %v168_v33, %v90_v46  ;;  %v2534_v49 = vmul.f32 -1.442695, %v188_v47 }
  0xe5   :  { %v170_v36 = vpop.f32.mrf.mxu0 }
  0xe6   :  { %v176_v37 = vadd.f32 %v170_v36, %v91_v35  ;;  %2794 = vtanh.f32 %v189_v34  ;;  %v190_v50 = vadd.f32 %v3346_v45, %v175_v48  ;;  %v2535_v30 = vmul.f32 -1.442695, %v189_v34 }
  0xe8   :  { %v191_v38 = vadd.f32 %v3331_v29, %v176_v37  ;;  %v2536_v51 = vmul.f32 -1.442695, %v190_v50 }
  0xea   :  { %2796 = vtanh.f32 %v191_v38  ;;  %v2537_v31 = vmul.f32 -1.442695, %v191_v38 }
  0xeb   :  { %2798 = vpow2.f32 %v2534_v49 }
  0xec   :  { %2800 = vpow2.f32 %v2536_v51 }
  0xf3   :  { %v2795_v39 = vpop.eup %2794 }
  0xf4   :  { %222 = vrot.lane.b32.xlu1 %v2795_v39, %s3102_s8 }
  0xf7   :  { %v2797_v40 = vpop.eup %2796 }
  0xf8   :  { %224 = vrot.lane.b32.xlu1 %v2797_v40, %s3102_s8  ;;  %v2799_v52 = vpop.eup %2798 }
  0xf9   :  { %v204_v53 = vadd.f32 1.0, %v2799_v52  ;;  %v2801_v54 = vpop.eup %2800 }
  0xfa   :  { %v206_v55 = vadd.f32 1.0, %v2801_v54 }
  0xfb   :  { %2802 = vrcp.f32 %v204_v53 }
  0xfc   :  { %2804 = vrcp.f32 %v206_v55 }
 0x108   :  { %v2803_v56 = vpop.eup %2802 }
 0x109   :  { %v2805_v59 = vpop.eup %2804  ;;  %v218_v62 = vmul.f32 0.0, %v2803_v56 }
 0x10a   :  { %v219_v20 = vmul.f32 0.0, %v2805_v59 }
 0x166   :  { %v223_v57 = vpop.permute.xlu1 %222 }
 0x167   :  { %v228_v58 = vmul.f32 %v2803_v56, %v223_v57 }
 0x169   :  { %232 = vrot.lane.b32.xlu0 %v228_v58, %s3102_s8 }
 0x16a   :  { %v225_v60 = vpop.permute.xlu1 %224 }
 0x16b   :  { %v229_v61 = vmul.f32 %v2805_v59, %v225_v60 }
 0x16d   :  { %234 = vrot.lane.b32.xlu1 %v229_v61, %s3102_s8 }
 0x1db   :  { %v233_v63 = vpop.permute.xlu0 %232 }
 0x1dc   :  { %v3353_v1 = vadd.f32 %v233_v63, %v218_v62 }
 0x1de   :  { %2806 = vtanh.f32 %v3353_v1 }
 0x1df   :  { %v235_v23 = vpop.permute.xlu1 %234 }
 0x1e0   :  { %v3356_v25 = vadd.f32 %v235_v23, %v219_v20 }
 0x1e2   :  { %2808 = vtanh.f32 %v3356_v25 }
 0x1e3   :  { %2810 = vpow2.f32 %v2535_v30 }
 0x1e4   :  { %2812 = vpow2.f32 %v2537_v31 }
 0x1eb   :  { %v2807_v27 = vpop.eup %2806 }
 0x1ec   :  { %244 = vrot.lane.b32.xlu0 %v2807_v27, %s3102_s8 }
 0x1ef   :  { %v2809_v28 = vpop.eup %2808 }
 0x1f0   :  { %246 = vrot.lane.b32.xlu1 %v2809_v28, %s3102_s8  ;;  %253 = vperm.xlu0 %2780, %v3221_v10   ;;  %v2811_v32 = vpop.eup %2810 }
 0x1f1   :  { %v205_v33 = vadd.f32 1.0, %v2811_v32  ;;  %v2813_v35 = vpop.eup %2812 }
 0x1f2   :  { %v207_v36 = vadd.f32 1.0, %v2813_v35 }
 0x1f3   :  { %2814 = vrcp.f32 %v205_v33 }
 0x1f4   :  { %257 = vperm.xlu1 %2781, %v3240_v13   ;;  %2816 = vrcp.f32 %v207_v36 }
 0x200   :  { %v2815_v37 = vpop.eup %2814 }
 0x201   :  { %v2817_v43 = vpop.eup %2816 }
 0x25e   :  { %v245_v39 = vpop.permute.xlu0 %244 }
 0x25f   :  { %v3363_v40 = vmul.f32 %v2815_v37, %v245_v39 }
 0x261   :  { %2538 = vmatmul.mubr.msk.f32.vlgmr.msra.gmra.mxu1 %vm92_vm0, %v3363_v40 }
 0x262   :  { %v247_v44 = vpop.permute.xlu1 %246  ;;  %340 = vmatprep.mubr.f32.mxu1 %v3100_v0  ;;  %613 = vmatpush1.msra.mxu1 %v3177_v3 }
 0x263   :  { %v3369_v34 = vmul.f32 %v2817_v43, %v247_v44  ;;  %614 = vmatprep.subr.mxu1 %v3182_v4 }
 0x264   :  { %615 = vmatpush1.msra.mxu1 %v3188_v5 }
 0x265   :  { %2539 = vmatmul.mubr.msk.f32.gmra.mxu1 %vm92_vm0, %v3369_v34  ;;  %616 = vmatprep.subr.mxu1 %v3195_v6 }
 0x266   :  { %617 = vmatpush1.msra.mxu1 %v3202_v7  ;;  %660 = vmatprep.mubr.f32.mxu1 %v3100_v0 }
 0x267   :  { %618 = vmatprep.subr.mxu1 %v3209_v8 }
 0x268   :  { %619 = vmatpush1.msra.mxu1 %v3216_v9 }
 0x269   :  { %620 = vmatprep.subr.mxu1 %v3228_v11 }
 0x26a   :  { %621 = vmatpush1.msra.mxu1 %v3235_v12 }
 0x26b   :  { %622 = vmatprep.subr.mxu1 %v3247_v14  ;;  %v254_v38 = vpop.permute.xlu0 %253 }
 0x26c   :  { %623 = vmatpush1.msra.mxu1 %v3254_v15  ;;  %v261_v46 = vmul.f32 %v254_v38, %v3324_v24  ;;  %v260_v59 = vmul.f32 %v254_v38, %v3342_v42 }
 0x26d   :  { %624 = vmatprep.subr.mxu1 %v3261_v16 }
 0x26e   :  { %625 = vmatpush1.msra.mxu1 %v3268_v17 }
 0x26f   :  { %626 = vmatprep.subr.mxu1 %v3275_v18  ;;  %v258_v48 = vpop.permute.xlu1 %257 }
 0x270   :  { %627 = vmatpush1.msra.mxu1 %v3282_v19  ;;  %v263_v51 = vmul.f32 %v258_v48, %v3324_v24  ;;  %v262_v61 = vmul.f32 %v258_v48, %v3342_v42 }
 0x271   :  { %938 = vmatprep.subr.mxu1 %v3172_v2 }
 0x321   :  { %v336_v47 = vpop.f32.mrf.mxu1 }
 0x322   :  { %v347_v60 = vadd.f32 %v336_v47, %v260_v59 }
 0x323   :  { %v338_v49 = vpop.f32.mrf.mxu1 }
 0x324   :  { %v348_v50 = vadd.f32 %v338_v49, %v261_v46  ;;  %v351_v62 = vadd.f32 %v347_v60, %v3346_v45  ;;  %v3104_v49 = vmov 2  }
 0x325   :  { %v342_v52 = vpop.f32.mrf.mxu1  ;;  %2782 = vset.pattern.permute.xlu1 %v3104_v49  ;;  %2783 = vset.pattern.permute.xlu0 %v3104_v49 }
 0x326   :  { %v352_v53 = vadd.f32 %v348_v50, %v3331_v29  ;;  %v349_v63 = vadd.f32 %v342_v52, %v262_v61  ;;  %v2540_v20 = vmul.f32 -1.442695, %v351_v62 }
 0x327   :  { %v344_v54 = vpop.f32.mrf.mxu1 }
 0x328   :  { %v350_v55 = vadd.f32 %v344_v54, %v263_v51  ;;  %2818 = vtanh.f32 %v352_v53  ;;  %v353_v23 = vadd.f32 %v349_v63, %v3346_v45 }
 0x32a   :  { %v354_v56 = vadd.f32 %v350_v55, %v3331_v29  ;;  %v2542_v26 = vmul.f32 -1.442695, %v353_v23 }
 0x32c   :  { %2820 = vtanh.f32 %v354_v56 }
 0x32d   :  { %2822 = vpow2.f32 %v2540_v20 }
 0x32e   :  { %2824 = vpow2.f32 %v2542_v26 }
 0x335   :  { %v2819_v57 = vpop.eup %2818 }
 0x336   :  { %385 = vrot.lane.b32.xlu1 %v2819_v57, %s3102_s8 }
 0x339   :  { %v2821_v58 = vpop.eup %2820 }
 0x33a   :  { %387 = vrot.lane.b32.xlu0 %v2821_v58, %s3102_s8  ;;  %v2823_v27 = vpop.eup %2822 }
 0x33b   :  { %v367_v28 = vadd.f32 1.0, %v2823_v27  ;;  %v2825_v30 = vpop.eup %2824 }
 0x33c   :  { %v369_v31 = vadd.f32 1.0, %v2825_v30 }
 0x33d   :  { %2826 = vrcp.f32 %v367_v28 }
 0x33e   :  { %2828 = vrcp.f32 %v369_v31 }
 0x34a   :  { %v2827_v32 = vpop.eup %2826 }
 0x34b   :  { %v2829_v36 = vpop.eup %2828  ;;  %v381_v43 = vmul.f32 %v2827_v32, %v3353_v1  ;;  %v2541_v1 = vmul.f32 -1.442695, %v352_v53 }
 0x34c   :  { %v382_v46 = vmul.f32 %v2829_v36, %v3356_v25  ;;  %v2543_v25 = vmul.f32 -1.442695, %v354_v56 }
 0x3a8   :  { %v386_v33 = vpop.permute.xlu1 %385 }
 0x3a9   :  { %v391_v35 = vmul.f32 %v2827_v32, %v386_v33 }
 0x3ab   :  { %395 = vrot.lane.b32.xlu1 %v391_v35, %s3102_s8 }
 0x3ac   :  { %v388_v37 = vpop.permute.xlu0 %387 }
 0x3ad   :  { %v392_v39 = vmul.f32 %v2829_v36, %v388_v37 }
 0x3af   :  { %397 = vrot.lane.b32.xlu0 %v392_v39, %s3102_s8 }
 0x41d   :  { %v396_v44 = vpop.permute.xlu1 %395 }
 0x41e   :  { %v3402_v38 = vadd.f32 %v396_v44, %v381_v43 }
 0x420   :  { %2830 = vtanh.f32 %v3402_v38 }
 0x421   :  { %v398_v47 = vpop.permute.xlu0 %397 }
 0x422   :  { %v3406_v48 = vadd.f32 %v398_v47, %v382_v46 }
 0x424   :  { %2832 = vtanh.f32 %v3406_v48 }
 0x425   :  { %2834 = vpow2.f32 %v2541_v1 }
 0x426   :  { %2836 = vpow2.f32 %v2543_v25 }
 0x42d   :  { %v2831_v50 = vpop.eup %2830 }
 0x42e   :  { %407 = vrot.lane.b32.xlu1 %v2831_v50, %s3102_s8 }
 0x431   :  { %v2833_v51 = vpop.eup %2832 }
 0x432   :  { %409 = vrot.lane.b32.xlu0 %v2833_v51, %s3102_s8  ;;  %416 = vperm.xlu1 %2782, %v3221_v10   ;;  %v2835_v52 = vpop.eup %2834 }
 0x433   :  { %v368_v54 = vadd.f32 1.0, %v2835_v52  ;;  %v2837_v55 = vpop.eup %2836 }
 0x434   :  { %v370_v57 = vadd.f32 1.0, %v2837_v55 }
 0x435   :  { %2838 = vrcp.f32 %v368_v54 }
 0x436   :  { %420 = vperm.xlu0 %2783, %v3240_v13   ;;  %2840 = vrcp.f32 %v370_v57 }
 0x442   :  { %v2839_v58 = vpop.eup %2838 }
 0x443   :  { %v2841_v61 = vpop.eup %2840 }
 0x4a0   :  { %v408_v59 = vpop.permute.xlu1 %407 }
 0x4a1   :  { %v3413_v60 = vmul.f32 %v2839_v58, %v408_v59 }
 0x4a3   :  { %2544 = vmatmul.mubr.msk.f32.vlgmr.msra.gmra.mxu0 %vm92_vm0, %v3413_v60 }
 0x4a4   :  { %v410_v62 = vpop.permute.xlu0 %409  ;;  %503 = vmatprep.mubr.f32.mxu0 %v3100_v0  ;;  %776 = vmatpush1.msra.mxu0 %v3177_v3 }
 0x4a5   :  { %v3419_v53 = vmul.f32 %v2841_v61, %v410_v62  ;;  %777 = vmatprep.subr.mxu0 %v3182_v4 }
 0x4a6   :  { %778 = vmatpush1.msra.mxu0 %v3188_v5 }
 0x4a7   :  { %2545 = vmatmul.mubr.msk.f32.gmra.mxu0 %vm92_vm0, %v3419_v53  ;;  %779 = vmatprep.subr.mxu0 %v3195_v6 }
 0x4a8   :  { %780 = vmatpush1.msra.mxu0 %v3202_v7  ;;  %823 = vmatprep.mubr.f32.mxu0 %v3100_v0 }
 0x4a9   :  { %781 = vmatprep.subr.mxu0 %v3209_v8 }
 0x4aa   :  { %782 = vmatpush1.msra.mxu0 %v3216_v9 }
 0x4ab   :  { %783 = vmatprep.subr.mxu0 %v3228_v11 }
 0x4ac   :  { %784 = vmatpush1.msra.mxu0 %v3235_v12 }
 0x4ad   :  { %785 = vmatprep.subr.mxu0 %v3247_v14  ;;  %v417_v56 = vpop.permute.xlu1 %416 }
 0x4ae   :  { %786 = vmatpush1.msra.mxu0 %v3254_v15  ;;  %v424_v63 = vmul.f32 %v417_v56, %v3324_v24  ;;  %v423_v39 = vmul.f32 %v417_v56, %v3342_v42 }
 0x4af   :  { %787 = vmatprep.subr.mxu0 %v3261_v16 }
 0x4b0   :  { %788 = vmatpush1.msra.mxu0 %v3268_v17 }
 0x4b1   :  { %789 = vmatprep.subr.mxu0 %v3275_v18  ;;  %v421_v26 = vpop.permute.xlu0 %420 }
 0x4b2   :  { %790 = vmatpush1.msra.mxu0 %v3282_v19  ;;  %v426_v28 = vmul.f32 %v421_v26, %v3324_v24  ;;  %v425_v44 = vmul.f32 %v421_v26, %v3342_v42 }
 0x4b3   :  { %1101 = vmatprep.subr.mxu0 %v3172_v2 }
 0x563   :  { %v499_v20 = vpop.f32.mrf.mxu0 }
 0x564   :  { %v510_v43 = vadd.f32 %v499_v20, %v423_v39 }
 0x565   :  { %v501_v23 = vpop.f32.mrf.mxu0 }
 0x566   :  { %v511_v27 = vadd.f32 %v501_v23, %v424_v63  ;;  %v514_v46 = vadd.f32 %v510_v43, %v3346_v45 }
 0x567   :  { %v505_v30 = vpop.f32.mrf.mxu0 }
 0x568   :  { %v515_v31 = vadd.f32 %v511_v27, %v3331_v29  ;;  %v512_v47 = vadd.f32 %v505_v30, %v425_v44  ;;  %v2546_v49 = vmul.f32 -1.442695, %v514_v46 }
 0x569   :  { %v507_v32 = vpop.f32.mrf.mxu0 }
 0x56a   :  { %v513_v33 = vadd.f32 %v507_v32, %v426_v28  ;;  %2842 = vtanh.f32 %v515_v31  ;;  %v516_v50 = vadd.f32 %v512_v47, %v3346_v45  ;;  %v3105_v28 = vmov 3  }
 0x56b   :  { %2784 = vset.pattern.permute.xlu0 %v3105_v28  ;;  %2785 = vset.pattern.permute.xlu1 %v3105_v28 }
 0x56c   :  { %v517_v35 = vadd.f32 %v513_v33, %v3331_v29  ;;  %v2548_v51 = vmul.f32 -1.442695, %v516_v50 }
 0x56e   :  { %2844 = vtanh.f32 %v517_v35 }
 0x56f   :  { %2846 = vpow2.f32 %v2546_v49 }
 0x570   :  { %2848 = vpow2.f32 %v2548_v51 }
 0x577   :  { %v2843_v36 = vpop.eup %2842 }
 0x578   :  { %548 = vrot.lane.b32.xlu1 %v2843_v36, %s3102_s8 }
 0x57b   :  { %v2845_v37 = vpop.eup %2844 }
 0x57c   :  { %550 = vrot.lane.b32.xlu1 %v2845_v37, %s3102_s8  ;;  %v2847_v1 = vpop.eup %2846 }
 0x57d   :  { %v530_v25 = vadd.f32 1.0, %v2847_v1  ;;  %v2849_v52 = vpop.eup %2848 }
 0x57e   :  { %v532_v54 = vadd.f32 1.0, %v2849_v52 }
 0x57f   :  { %2850 = vrcp.f32 %v530_v25 }
 0x580   :  { %2852 = vrcp.f32 %v532_v54 }
 0x58c   :  { %v2851_v55 = vpop.eup %2850 }
 0x58d   :  { %v2853_v59 = vpop.eup %2852  ;;  %v544_v56 = vmul.f32 %v2851_v55, %v3402_v38  ;;  %v2547_v38 = vmul.f32 -1.442695, %v515_v31 }
 0x58e   :  { %v545_v23 = vmul.f32 %v2853_v59, %v3406_v48  ;;  %v2549_v48 = vmul.f32 -1.442695, %v517_v35 }
 0x5ea   :  { %v549_v57 = vpop.permute.xlu1 %548 }
 0x5eb   :  { %v554_v58 = vmul.f32 %v2851_v55, %v549_v57 }
 0x5ed   :  { %558 = vrot.lane.b32.xlu0 %v554_v58, %s3102_s8 }
 0x5ee   :  { %v551_v61 = vpop.permute.xlu1 %550 }
 0x5ef   :  { %v555_v62 = vmul.f32 %v2853_v59, %v551_v61 }
 0x5f1   :  { %560 = vrot.lane.b32.xlu1 %v555_v62, %s3102_s8 }
 0x65f   :  { %v559_v63 = vpop.permute.xlu0 %558 }
 0x660   :  { %v3452_v20 = vadd.f32 %v559_v63, %v544_v56 }
 0x662   :  { %2854 = vtanh.f32 %v3452_v20 }
 0x663   :  { %v561_v26 = vpop.permute.xlu1 %560 }
 0x664   :  { %v3456_v27 = vadd.f32 %v561_v26, %v545_v23 }
 0x666   :  { %2856 = vtanh.f32 %v3456_v27 }
 0x667   :  { %2858 = vpow2.f32 %v2547_v38 }
 0x668   :  { %2860 = vpow2.f32 %v2549_v48 }
 0x66f   :  { %v2855_v30 = vpop.eup %2854 }
 0x670   :  { %570 = vrot.lane.b32.xlu0 %v2855_v30, %s3102_s8 }
 0x673   :  { %v2857_v32 = vpop.eup %2856 }
 0x674   :  { %572 = vrot.lane.b32.xlu1 %v2857_v32, %s3102_s8  ;;  %579 = vperm.xlu0 %2784, %v3221_v10   ;;  %v2859_v33 = vpop.eup %2858 }
 0x675   :  { %v531_v36 = vadd.f32 1.0, %v2859_v33  ;;  %v2861_v37 = vpop.eup %2860 }
 0x676   :  { %v533_v39 = vadd.f32 1.0, %v2861_v37 }
 0x677   :  { %2862 = vrcp.f32 %v531_v36 }
 0x678   :  { %583 = vperm.xlu1 %2785, %v3240_v13   ;;  %2864 = vrcp.f32 %v533_v39 }
 0x684   :  { %v2863_v43 = vpop.eup %2862 }
 0x685   :  { %v2865_v47 = vpop.eup %2864 }
 0x6e2   :  { %v571_v44 = vpop.permute.xlu0 %570 }
 0x6e3   :  { %v3463_v46 = vmul.f32 %v2863_v43, %v571_v44 }
 0x6e5   :  { %2550 = vmatmul.mubr.msk.f32.vlgmr.msra.gmra.mxu1 %vm92_vm0, %v3463_v46 }
 0x6e6   :  { %v573_v49 = vpop.permute.xlu1 %572  ;;  %666 = vmatprep.mubr.f32.mxu1 %v3100_v0  ;;  %939 = vmatpush1.msra.mxu1 %v3177_v3 }
 0x6e7   :  { %v3469_v31 = vmul.f32 %v2865_v47, %v573_v49  ;;  %940 = vmatprep.subr.mxu1 %v3182_v4 }
 0x6e8   :  { %941 = vmatpush1.msra.mxu1 %v3188_v5 }
 0x6e9   :  { %2551 = vmatmul.mubr.msk.f32.gmra.mxu1 %vm92_vm0, %v3469_v31  ;;  %942 = vmatprep.subr.mxu1 %v3195_v6 }
 0x6ea   :  { %943 = vmatpush1.msra.mxu1 %v3202_v7  ;;  %986 = vmatprep.mubr.f32.mxu1 %v3100_v0 }
 0x6eb   :  { %944 = vmatprep.subr.mxu1 %v3209_v8 }
 0x6ec   :  { %945 = vmatpush1.msra.mxu1 %v3216_v9 }
 0x6ed   :  { %946 = vmatprep.subr.mxu1 %v3228_v11 }
 0x6ee   :  { %947 = vmatpush1.msra.mxu1 %v3235_v12 }
 0x6ef   :  { %948 = vmatprep.subr.mxu1 %v3247_v14  ;;  %v580_v35 = vpop.permute.xlu0 %579 }
 0x6f0   :  { %949 = vmatpush1.msra.mxu1 %v3254_v15  ;;  %v587_v50 = vmul.f32 %v580_v35, %v3324_v24  ;;  %v586_v56 = vmul.f32 %v580_v35, %v3342_v42 }
 0x6f1   :  { %950 = vmatprep.subr.mxu1 %v3261_v16 }
 0x6f2   :  { %951 = vmatpush1.msra.mxu1 %v3268_v17 }
 0x6f3   :  { %952 = vmatprep.subr.mxu1 %v3275_v18  ;;  %v584_v1 = vpop.permute.xlu1 %583 }
 0x6f4   :  { %953 = vmatpush1.msra.mxu1 %v3282_v19  ;;  %v589_v54 = vmul.f32 %v584_v1, %v3324_v24  ;;  %v588_v23 = vmul.f32 %v584_v1, %v3342_v42 }
 0x6f5   :  { %1264 = vmatprep.subr.mxu1 %v3172_v2 }
 0x7a5   :  { %v662_v51 = vpop.f32.mrf.mxu1 }
 0x7a6   :  { %v673_v63 = vadd.f32 %v662_v51, %v586_v56 }
 0x7a7   :  { %v664_v25 = vpop.f32.mrf.mxu1 }
 0x7a8   :  { %v674_v52 = vadd.f32 %v664_v25, %v587_v50  ;;  %v677_v26 = vadd.f32 %v673_v63, %v3346_v45 }
 0x7a9   :  { %v668_v55 = vpop.f32.mrf.mxu1 }
 0x7aa   :  { %v678_v57 = vadd.f32 %v674_v52, %v3331_v29  ;;  %v675_v28 = vadd.f32 %v668_v55, %v588_v23  ;;  %v2552_v30 = vmul.f32 -1.442695, %v677_v26  ;;  %v3106_v55 = vmov 4  }
 0x7ab   :  { %v670_v58 = vpop.f32.mrf.mxu1  ;;  %2786 = vset.pattern.permute.xlu1 %v3106_v55  ;;  %2787 = vset.pattern.permute.xlu0 %v3106_v55 }
 0x7ac   :  { %v676_v59 = vadd.f32 %v670_v58, %v589_v54  ;;  %2866 = vtanh.f32 %v678_v57  ;;  %v679_v32 = vadd.f32 %v675_v28, %v3346_v45 }
 0x7ae   :  { %v680_v61 = vadd.f32 %v676_v59, %v3331_v29  ;;  %v2554_v38 = vmul.f32 -1.442695, %v679_v32 }
 0x7b0   :  { %2868 = vtanh.f32 %v680_v61 }
 0x7b1   :  { %2870 = vpow2.f32 %v2552_v30 }
 0x7b2   :  { %2872 = vpow2.f32 %v2554_v38 }
 0x7b9   :  { %v2867_v62 = vpop.eup %2866 }
 0x7ba   :  { %711 = vrot.lane.b32.xlu1 %v2867_v62, %s3102_s8 }
 0x7bd   :  { %v2869_v2 = vpop.eup %2868 }
 0x7be   :  { %713 = vrot.lane.b32.xlu0 %v2869_v2, %s3102_s8  ;;  %v2871_v48 = vpop.eup %2870 }
 0x7bf   :  { %v693_v33 = vadd.f32 1.0, %v2871_v48  ;;  %v2873_v36 = vpop.eup %2872 }
 0x7c0   :  { %v695_v37 = vadd.f32 1.0, %v2873_v36 }
 0x7c1   :  { %2874 = vrcp.f32 %v693_v33 }
 0x7c2   :  { %2876 = vrcp.f32 %v695_v37 }
 0x7ce   :  { %v2875_v39 = vpop.eup %2874 }
 0x7cf   :  { %v2877_v47 = vpop.eup %2876  ;;  %v707_v50 = vmul.f32 %v2875_v39, %v3452_v20  ;;  %v2553_v20 = vmul.f32 -1.442695, %v678_v57 }
 0x7d0   :  { %v708_v25 = vmul.f32 %v2877_v47, %v3456_v27  ;;  %v2555_v27 = vmul.f32 -1.442695, %v680_v61 }
 0x82c   :  { %v712_v43 = vpop.permute.xlu1 %711 }
 0x82d   :  { %v717_v44 = vmul.f32 %v2875_v39, %v712_v43 }
 0x82f   :  { %721 = vrot.lane.b32.xlu1 %v717_v44, %s3102_s8 }
 0x830   :  { %v714_v49 = vpop.permute.xlu0 %713 }
 0x831   :  { %v718_v35 = vmul.f32 %v2877_v47, %v714_v49 }
 0x833   :  { %723 = vrot.lane.b32.xlu0 %v718_v35, %s3102_s8 }
 0x8a1   :  { %v722_v51 = vpop.permute.xlu1 %721 }
 0x8a2   :  { %v3502_v1 = vadd.f32 %v722_v51, %v707_v50 }
 0x8a4   :  { %2878 = vtanh.f32 %v3502_v1 }
 0x8a5   :  { %v724_v52 = vpop.permute.xlu0 %723 }
 0x8a6   :  { %v3506_v54 = vadd.f32 %v724_v52, %v708_v25 }
 0x8a8   :  { %2880 = vtanh.f32 %v3506_v54 }
 0x8a9   :  { %2882 = vpow2.f32 %v2553_v20 }
 0x8aa   :  { %2884 = vpow2.f32 %v2555_v27 }
 0x8b1   :  { %v2879_v58 = vpop.eup %2878 }
 0x8b2   :  { %733 = vrot.lane.b32.xlu1 %v2879_v58, %s3102_s8 }
 0x8b5   :  { %v2881_v59 = vpop.eup %2880 }
 0x8b6   :  { %735 = vrot.lane.b32.xlu0 %v2881_v59, %s3102_s8  ;;  %742 = vperm.xlu1 %2786, %v3221_v10   ;;  %v2883_v62 = vpop.eup %2882 }
 0x8b7   :  { %v694_v2 = vadd.f32 1.0, %v2883_v62  ;;  %v2885_v56 = vpop.eup %2884 }
 0x8b8   :  { %v696_v63 = vadd.f32 1.0, %v2885_v56  ;;  %v3107_v56 = vmov 5  }
 0x8b9   :  { %2886 = vrcp.f32 %v694_v2 }
 0x8ba   :  { %746 = vperm.xlu0 %2787, %v3240_v13   ;;  %2888 = vrcp.f32 %v696_v63  ;;  %2789 = vset.pattern.permute.xlu1 %v3107_v56 }
 0x8be   :  { %2788 = vset.pattern.permute.xlu0 %v3107_v56 }
 0x8c6   :  { %v2887_v23 = vpop.eup %2886 }
 0x8c7   :  { %v2889_v30 = vpop.eup %2888 }
 0x924   :  { %v734_v26 = vpop.permute.xlu1 %733 }
 0x925   :  { %v3513_v28 = vmul.f32 %v2887_v23, %v734_v26 }
 0x927   :  { %2556 = vmatmul.mubr.msk.f32.vlgmr.msra.gmra.mxu0 %vm92_vm0, %v3513_v28 }
 0x928   :  { %v736_v32 = vpop.permute.xlu0 %735  ;;  %829 = vmatprep.mubr.f32.mxu0 %v3100_v0  ;;  %1102 = vmatpush1.msra.mxu0 %v3177_v3 }
 0x929   :  { %v3519_v57 = vmul.f32 %v2889_v30, %v736_v32  ;;  %1103 = vmatprep.subr.mxu0 %v3182_v4 }
 0x92a   :  { %1104 = vmatpush1.msra.mxu0 %v3188_v5 }
 0x92b   :  { %2557 = vmatmul.mubr.msk.f32.gmra.mxu0 %vm92_vm0, %v3519_v57  ;;  %1105 = vmatprep.subr.mxu0 %v3195_v6 }
 0x92c   :  { %1106 = vmatpush1.msra.mxu0 %v3202_v7  ;;  %1149 = vmatprep.mubr.f32.mxu0 %v3100_v0 }
 0x92d   :  { %1107 = vmatprep.subr.mxu0 %v3209_v8 }
 0x92e   :  { %1108 = vmatpush1.msra.mxu0 %v3216_v9 }
 0x92f   :  { %1109 = vmatprep.subr.mxu0 %v3228_v11 }
 0x930   :  { %1110 = vmatpush1.msra.mxu0 %v3235_v12 }
 0x931   :  { %1111 = vmatprep.subr.mxu0 %v3247_v14  ;;  %v743_v3 = vpop.permute.xlu1 %742 }
 0x932   :  { %1112 = vmatpush1.msra.mxu0 %v3254_v15  ;;  %v750_v4 = vmul.f32 %v743_v3, %v3324_v24 }
 0x933   :  { %1113 = vmatprep.subr.mxu0 %v3261_v16 }
 0x934   :  { %1114 = vmatpush1.msra.mxu0 %v3268_v17 }
 0x935   :  { %1115 = vmatprep.subr.mxu0 %v3275_v18  ;;  %v747_v7 = vpop.permute.xlu0 %746 }
 0x936   :  { %1116 = vmatpush1.msra.mxu0 %v3282_v19  ;;  %v752_v9 = vmul.f32 %v747_v7, %v3324_v24  ;;  %v749_v19 = vmul.f32 %v743_v3, %v3342_v42  ;;  %v751_v38 = vmul.f32 %v747_v7, %v3342_v42 }
 0x9e7   :  { %v825_v5 = vpop.f32.mrf.mxu0 }
 0x9e8   :  { %v836_v61 = vadd.f32 %v825_v5, %v749_v19  ;;  %v3067_v19 = vld [vmem:[%s4278_s6 + $0x28] sm:$0xff] }
 0x9e9   :  { %v827_v6 = vpop.f32.mrf.mxu0 }
 0x9ea   :  { %v837_v8 = vadd.f32 %v827_v6, %v750_v4  ;;  %v840_v48 = vadd.f32 %v836_v61, %v3346_v45  ;;  %v3068_v61 = vld [vmem:[%s4278_s6 + $0x20] sm:$0xff] }
 0x9eb   :  { %v831_v11 = vpop.f32.mrf.mxu0 }
 0x9ec   :  { %v841_v12 = vadd.f32 %v837_v8, %v3331_v29  ;;  %v838_v33 = vadd.f32 %v831_v11, %v751_v38  ;;  %v2558_v36 = vmul.f32 -1.442695, %v840_v48  ;;  %v3060_v11 = vld [vmem:[%s4278_s6 + $0x60] sm:$0xff]  ;;  %v3069_v38 = vld [vmem:[%s4278_s6 + $0x18] sm:$0xff]  ;;  %v3070_v48 = vld [vmem:[%s4278_s6 + $0x10] sm:$0xff] }
 0x9ed   :  { %v833_v14 = vpop.f32.mrf.mxu0 }
 0x9ee   :  { %v839_v15 = vadd.f32 %v833_v14, %v752_v9  ;;  %2890 = vtanh.f32 %v841_v12  ;;  %v842_v37 = vadd.f32 %v838_v33, %v3346_v45  ;;  %v3059_v9 = vld [vmem:[%s4278_s6 + $0x68] sm:$0xff]  ;;  %v3062_v14 = vld [vmem:[%s4278_s6 + $0x50] sm:$0xff] }
 0x9ef   :  { %v3071_v33 = vld [vmem:[%s4278_s6 + $0x8] sm:$0xff] }
 0x9f0   :  { %v843_v16 = vadd.f32 %v839_v15, %v3331_v29  ;;  %v2560_v39 = vmul.f32 -1.442695, %v842_v37  ;;  %v3063_v15 = vld [vmem:[%s4278_s6 + $0x48] sm:$0xff] }
 0x9f2   :  { %2892 = vtanh.f32 %v843_v16 }
 0x9f3   :  { %2894 = vpow2.f32 %v2558_v36  ;;  %v3072_v36 = vld [vmem:[%s4278_s6] sm:$0xff] }
 0x9f4   :  { %2896 = vpow2.f32 %v2560_v39 }
 0x9fb   :  { %v2891_v17 = vpop.eup %2890 }
 0x9fc   :  { %874 = vrot.lane.b32.xlu1 %v2891_v17, %s3102_s8  ;;  %v3065_v17 = vld [vmem:[%s4278_s6 + $0x38] sm:$0xff] }
 0x9ff   :  { %v2893_v18 = vpop.eup %2892 }
 0xa00   :  { %876 = vrot.lane.b32.xlu1 %v2893_v18, %s3102_s8  ;;  %v2895_v43 = vpop.eup %2894  ;;  %v3066_v18 = vld [vmem:[%s4278_s6 + $0x30] sm:$0xff] }
 0xa01   :  { %v856_v44 = vadd.f32 1.0, %v2895_v43  ;;  %v2897_v47 = vpop.eup %2896 }
 0xa02   :  { %v858_v49 = vadd.f32 1.0, %v2897_v47 }
 0xa03   :  { %2898 = vrcp.f32 %v856_v44 }
 0xa04   :  { %2900 = vrcp.f32 %v858_v49 }
 0xa10   :  { %v2899_v35 = vpop.eup %2898 }
 0xa11   :  { %v2901_v25 = vpop.eup %2900  ;;  %v870_v58 = vmul.f32 %v2899_v35, %v3502_v1  ;;  %v2559_v1 = vmul.f32 -1.442695, %v841_v12  ;;  %v3061_v12 = vld [vmem:[%s4278_s6 + $0x58] sm:$0xff] }
 0xa12   :  { %v871_v27 = vmul.f32 %v2901_v25, %v3506_v54  ;;  %v2561_v54 = vmul.f32 -1.442695, %v843_v16  ;;  %v3064_v16 = vld [vmem:[%s4278_s6 + $0x40] sm:$0xff] }
 0xa6e   :  { %v875_v50 = vpop.permute.xlu1 %874 }
 0xa6f   :  { %v880_v51 = vmul.f32 %v2899_v35, %v875_v50 }
 0xa71   :  { %884 = vrot.lane.b32.xlu0 %v880_v51, %s3102_s8 }
 0xa72   :  { %v877_v52 = vpop.permute.xlu1 %876 }
 0xa73   :  { %v881_v55 = vmul.f32 %v2901_v25, %v877_v52 }
 0xa75   :  { %886 = vrot.lane.b32.xlu1 %v881_v55, %s3102_s8 }
 0xae3   :  { %v885_v59 = vpop.permute.xlu0 %884 }
 0xae4   :  { %v3551_v20 = vadd.f32 %v885_v59, %v870_v58 }
 0xae6   :  { %2902 = vtanh.f32 %v3551_v20 }
 0xae7   :  { %v887_v62 = vpop.permute.xlu1 %886 }
 0xae8   :  { %v3555_v2 = vadd.f32 %v887_v62, %v871_v27 }
 0xaea   :  { %2904 = vtanh.f32 %v3555_v2 }
 0xaeb   :  { %2906 = vpow2.f32 %v2559_v1 }
 0xaec   :  { %2908 = vpow2.f32 %v2561_v54 }
 0xaf3   :  { %v2903_v63 = vpop.eup %2902 }
 0xaf4   :  { %896 = vrot.lane.b32.xlu0 %v2903_v63, %s3102_s8 }
 0xaf7   :  { %v2905_v23 = vpop.eup %2904 }
 0xaf8   :  { %898 = vrot.lane.b32.xlu1 %v2905_v23, %s3102_s8  ;;  %905 = vperm.xlu0 %2788, %v3221_v10   ;;  %v2907_v26 = vpop.eup %2906 }
 0xaf9   :  { %v857_v30 = vadd.f32 1.0, %v2907_v26  ;;  %v2909_v32 = vpop.eup %2908 }
 0xafa   :  { %v859_v3 = vadd.f32 1.0, %v2909_v32 }
 0xafb   :  { %2910 = vrcp.f32 %v857_v30 }
 0xafc   :  { %909 = vperm.xlu1 %2789, %v3240_v13   ;;  %2912 = vrcp.f32 %v859_v3  ;;  %v3058_v13 = vld [vmem:[%s4278_s6 + $0x70] sm:$0xff]  ;;  %s3112_s6 = smov 4  }
 0xb08   :  { %v2911_v4 = vpop.eup %2910 }
 0xb09   :  { %v2913_v10 = vpop.eup %2912 }
 0xb66   :  { %v897_v5 = vpop.permute.xlu0 %896 }
 0xb67   :  { %v3562_v6 = vmul.f32 %v2911_v4, %v897_v5 }
 0xb69   :  { %2562 = vmatmul.mubr.msk.f32.vlgmr.msra.gmra.mxu1 %vm92_vm0, %v3562_v6 }
 0xb6a   :  { %v899_v7 = vpop.permute.xlu1 %898  ;;  %992 = vmatprep.mubr.f32.mxu1 %v3100_v0  ;;  %1265 = vmatpush1.msra.mxu1 %v3058_v13 }
 0xb6b   :  { %v3570_v8 = vmul.f32 %v2913_v10, %v899_v7  ;;  %1266 = vmatprep.subr.mxu1 %v3059_v9 }
 0xb6c   :  { %1267 = vmatpush1.msra.mxu1 %v3060_v11 }
 0xb6d   :  { %2563 = vmatmul.mubr.msk.f32.gmra.mxu1 %vm92_vm0, %v3570_v8  ;;  %1268 = vmatprep.subr.mxu1 %v3061_v12 }
 0xb6e   :  { %1269 = vmatpush1.msra.mxu1 %v3062_v14  ;;  %1312 = vmatprep.mubr.f32.mxu1 %v3100_v0 }
 0xb6f   :  { %1270 = vmatprep.subr.mxu1 %v3063_v15 }
 0xb70   :  { %1271 = vmatpush1.msra.mxu1 %v3064_v16 }
 0xb71   :  { %1272 = vmatprep.subr.mxu1 %v3065_v17 }
 0xb72   :  { %1273 = vmatpush1.msra.mxu1 %v3066_v18 }
 0xb73   :  { %1274 = vmatprep.subr.mxu1 %v3067_v19  ;;  %v906_v37 = vpop.permute.xlu0 %905  ;;  %v3108_v19 = vmov 6  }
 0xb74   :  { %1275 = vmatpush1.msra.mxu1 %v3068_v61  ;;  %v913_v39 = vmul.f32 %v906_v37, %v3324_v24  ;;  %v912_v27 = vmul.f32 %v906_v37, %v3342_v42  ;;  %2790 = vset.pattern.permute.xlu1 %v3108_v19 }
 0xb75   :  { %1276 = vmatprep.subr.mxu1 %v3069_v38  ;;  %2791 = vset.pattern.permute.xlu0 %v3108_v19 }
 0xb76   :  { %1277 = vmatpush1.msra.mxu1 %v3070_v48 }
 0xb77   :  { %1278 = vmatprep.subr.mxu1 %v3071_v33  ;;  %v910_v44 = vpop.permute.xlu1 %909 }
 0xb78   :  { %1279 = vmatpush1.msra.mxu1 %v3072_v36  ;;  %v915_v49 = vmul.f32 %v910_v44, %v3324_v24  ;;  %v914_v56 = vmul.f32 %v910_v44, %v3342_v42 }
 0xc29   :  { %v988_v43 = vpop.f32.mrf.mxu1 }
 0xc2a   :  { %v999_v62 = vadd.f32 %v988_v43, %v912_v27 }
 0xc2b   :  { %v990_v47 = vpop.f32.mrf.mxu1 }
 0xc2c   :  { %v1000_v35 = vadd.f32 %v990_v47, %v913_v39  ;;  %v1003_v63 = vadd.f32 %v999_v62, %v3346_v45 }
 0xc2d   :  { %v994_v50 = vpop.f32.mrf.mxu1 }
 0xc2e   :  { %v1004_v51 = vadd.f32 %v1000_v35, %v3331_v29  ;;  %v1001_v23 = vadd.f32 %v994_v50, %v914_v56  ;;  %v2564_v1 = vmul.f32 -1.442695, %v1003_v63 }
 0xc2f   :  { %v996_v25 = vpop.f32.mrf.mxu1 }
 0xc30   :  { %v1002_v52 = vadd.f32 %v996_v25, %v915_v49  ;;  %2914 = vtanh.f32 %v1004_v51  ;;  %v1005_v54 = vadd.f32 %v1001_v23, %v3346_v45  ;;  %v2565_v48 = vmul.f32 -1.442695, %v1004_v51 }
 0xc32   :  { %v1006_v55 = vadd.f32 %v1002_v52, %v3331_v29  ;;  %v2566_v26 = vmul.f32 -1.442695, %v1005_v54 }
 0xc34   :  { %2916 = vtanh.f32 %v1006_v55  ;;  %v2567_v33 = vmul.f32 -1.442695, %v1006_v55 }
 0xc35   :  { %2918 = vpow2.f32 %v2564_v1 }
 0xc36   :  { %2920 = vpow2.f32 %v2566_v26 }
 0xc3d   :  { %v2915_v58 = vpop.eup %2914 }
 0xc3e   :  { %1037 = vrot.lane.b32.xlu1 %v2915_v58, %s3102_s8 }
 0xc41   :  { %v2917_v59 = vpop.eup %2916 }
 0xc42   :  { %1039 = vrot.lane.b32.xlu0 %v2917_v59, %s3102_s8  ;;  %v2919_v30 = vpop.eup %2918 }
 0xc43   :  { %v1019_v32 = vadd.f32 1.0, %v2919_v30  ;;  %v2921_v3 = vpop.eup %2920 }
 0xc44   :  { %v1021_v4 = vadd.f32 1.0, %v2921_v3 }
 0xc45   :  { %2922 = vrcp.f32 %v1019_v32 }
 0xc46   :  { %2924 = vrcp.f32 %v1021_v4 }
 0xc52   :  { %v2923_v5 = vpop.eup %2922 }
 0xc53   :  { %v2925_v13 = vpop.eup %2924  ;;  %v1033_v12 = vmul.f32 %v2923_v5, %v3551_v20  ;;  %v3642_v20 = vld [vmem:[%s4272_s0] sm:$0xff] }
 0xc54   :  { %v1034_v16 = vmul.f32 %v2925_v13, %v3555_v2  ;;  %v3648_v2 = vld [vmem:[%s4272_s0 + $0x8] sm:$0xff] }
 0xcb0   :  { %v1038_v10 = vpop.permute.xlu1 %1037 }
 0xcb1   :  { %v1043_v7 = vmul.f32 %v2923_v5, %v1038_v10 }
 0xcb3   :  { %1047 = vrot.lane.b32.xlu1 %v1043_v7, %s3102_s8 }
 0xcb4   :  { %v1040_v9 = vpop.permute.xlu0 %1039 }
 0xcb5   :  { %v1044_v11 = vmul.f32 %v2925_v13, %v1040_v9 }
 0xcb7   :  { %1049 = vrot.lane.b32.xlu0 %v1044_v11, %s3102_s8 }
 0xd25   :  { %v1048_v14 = vpop.permute.xlu1 %1047 }
 0xd26   :  { %v3630_v15 = vadd.f32 %v1048_v14, %v1033_v12 }
 0xd28   :  { %2926 = vtanh.f32 %v3630_v15 }
 0xd29   :  { %v1050_v17 = vpop.permute.xlu0 %1049 }
 0xd2a   :  { %v3634_v18 = vadd.f32 %v1050_v17, %v1034_v16 }
 0xd2c   :  { %2928 = vtanh.f32 %v3634_v18 }
 0xd2d   :  { %2930 = vpow2.f32 %v2565_v48 }
 0xd2e   :  { %2932 = vpow2.f32 %v2567_v33 }
 0xd35   :  { %v2927_v61 = vpop.eup %2926 }
 0xd36   :  { %1059 = vrot.lane.b32.xlu1 %v2927_v61, %s3102_s8 }
 0xd39   :  { %v2929_v38 = vpop.eup %2928 }
 0xd3a   :  { %1061 = vrot.lane.b32.xlu0 %v2929_v38, %s3102_s8  ;;  %1068 = vperm.xlu1 %2790, %v3642_v20   ;;  %v2931_v36 = vpop.eup %2930 }
 0xd3b   :  { %v1020_v37 = vadd.f32 1.0, %v2931_v36  ;;  %v2933_v39 = vpop.eup %2932 }
 0xd3c   :  { %v1022_v43 = vadd.f32 1.0, %v2933_v39 }
 0xd3d   :  { %2934 = vrcp.f32 %v1020_v37 }
 0xd3e   :  { %1072 = vperm.xlu0 %2791, %v3648_v2   ;;  %2936 = vrcp.f32 %v1022_v43 }
 0xd4a   :  { %v2935_v44 = vpop.eup %2934 }
 0xd4b   :  { %v2937_v35 = vpop.eup %2936 }
 0xda8   :  { %v1060_v47 = vpop.permute.xlu1 %1059 }
 0xda9   :  { %v3651_v49 = vmul.f32 %v2935_v44, %v1060_v47 }
 0xdab   :  { %2568 = vmatmul.mubr.msk.f32.vlgmr.msra.gmra.mxu0 %vm92_vm0, %v3651_v49 }
 0xdac   :  { %v1062_v50 = vpop.permute.xlu0 %1061  ;;  %1155 = vmatprep.mubr.f32.mxu0 %v3100_v0 }
 0xdad   :  { %v3656_v51 = vmul.f32 %v2937_v35, %v1062_v50  ;;  %v3109_v35 = vmov 7  }
 0xdae   :  { %2792 = vset.pattern.permute.xlu0 %v3109_v35  ;;  %2793 = vset.pattern.permute.xlu1 %v3109_v35 }
 0xdaf   :  { %2569 = vmatmul.mubr.msk.f32.gmra.mxu0 %vm92_vm0, %v3656_v51 }
 0xdb5   :  { %v1069_v25 = vpop.permute.xlu1 %1068 }
 0xdb6   :  { %v1076_v52 = vmul.f32 %v1069_v25, %v3324_v24  ;;  %v1075_v32 = vmul.f32 %v1069_v25, %v3342_v42 }
 0xdb9   :  { %v1073_v59 = vpop.permute.xlu0 %1072 }
 0xdba   :  { %v1078_v62 = vmul.f32 %v1073_v59, %v3324_v24  ;;  %v1077_v4 = vmul.f32 %v1073_v59, %v3342_v42 }
 0xe6b   :  { %v1151_v55 = vpop.f32.mrf.mxu0 }
 0xe6c   :  { %v1162_v3 = vadd.f32 %v1151_v55, %v1075_v32 }
 0xe6d   :  { %v1153_v58 = vpop.f32.mrf.mxu0 }
 0xe6e   :  { %v1163_v27 = vadd.f32 %v1153_v58, %v1076_v52  ;;  %v1166_v5 = vadd.f32 %v1162_v3, %v3346_v45 }
 0xe6f   :  { %v1157_v56 = vpop.f32.mrf.mxu0 }
 0xe70   :  { %v1167_v63 = vadd.f32 %v1163_v27, %v3331_v29  ;;  %v1164_v10 = vadd.f32 %v1157_v56, %v1077_v4  ;;  %v2570_v7 = vmul.f32 -1.442695, %v1166_v5 }
 0xe71   :  { %v1159_v23 = vpop.f32.mrf.mxu0 }
 0xe72   :  { %v1165_v1 = vadd.f32 %v1159_v23, %v1078_v62  ;;  %2938 = vtanh.f32 %v1167_v63  ;;  %v1168_v13 = vadd.f32 %v1164_v10, %v3346_v45 }
 0xe74   :  { %v1169_v54 = vadd.f32 %v1165_v1, %v3331_v29  ;;  %v2572_v9 = vmul.f32 -1.442695, %v1168_v13  ;;  %v3706_v13 = vld [vmem:[%s4279_s7] sm:$0xff] }
 0xe76   :  { %2940 = vtanh.f32 %v1169_v54 }
 0xe77   :  { %2942 = vpow2.f32 %v2570_v7 }
 0xe78   :  { %2944 = vpow2.f32 %v2572_v9 }
 0xe7f   :  { %v2939_v26 = vpop.eup %2938 }
 0xe80   :  { %1200 = vrot.lane.b32.xlu1 %v2939_v26, %s3102_s8 }
 0xe83   :  { %v2941_v30 = vpop.eup %2940 }
 0xe84   :  { %1202 = vrot.lane.b32.xlu1 %v2941_v30, %s3102_s8  ;;  %v2943_v11 = vpop.eup %2942 }
 0xe85   :  { %v1182_v12 = vadd.f32 1.0, %v2943_v11  ;;  %v2945_v14 = vpop.eup %2944 }
 0xe86   :  { %v1184_v16 = vadd.f32 1.0, %v2945_v14 }
 0xe87   :  { %2946 = vrcp.f32 %v1182_v12 }
 0xe88   :  { %2948 = vrcp.f32 %v1184_v16 }
 0xe94   :  { %v2947_v17 = vpop.eup %2946 }
 0xe95   :  { %v2949_v38 = vpop.eup %2948  ;;  %v1196_v36 = vmul.f32 %v2947_v17, %v3630_v15  ;;  %v2571_v15 = vmul.f32 -1.442695, %v1167_v63 }
 0xe96   :  { %v1197_v43 = vmul.f32 %v2949_v38, %v3634_v18  ;;  %v2573_v18 = vmul.f32 -1.442695, %v1169_v54 }
 0xef2   :  { %v1201_v19 = vpop.permute.xlu1 %1200 }
 0xef3   :  { %v1206_v61 = vmul.f32 %v2947_v17, %v1201_v19 }
 0xef5   :  { %1210 = vrot.lane.b32.xlu0 %v1206_v61, %s3102_s8 }
 0xef6   :  { %v1203_v48 = vpop.permute.xlu1 %1202 }
 0xef7   :  { %v1207_v33 = vmul.f32 %v2949_v38, %v1203_v48 }
 0xef9   :  { %1212 = vrot.lane.b32.xlu1 %v1207_v33, %s3102_s8 }
 0xf67   :  { %v1211_v37 = vpop.permute.xlu0 %1210 }
 0xf68   :  { %v3673_v39 = vadd.f32 %v1211_v37, %v1196_v36 }
 0xf6a   :  { %2950 = vtanh.f32 %v3673_v39 }
 0xf6b   :  { %v1213_v44 = vpop.permute.xlu1 %1212 }
 0xf6c   :  { %v3677_v47 = vadd.f32 %v1213_v44, %v1197_v43 }
 0xf6e   :  { %2952 = vtanh.f32 %v3677_v47 }
 0xf6f   :  { %2954 = vpow2.f32 %v2571_v15 }
 0xf70   :  { %2956 = vpow2.f32 %v2573_v18 }
 0xf77   :  { %v2951_v50 = vpop.eup %2950 }
 0xf78   :  { %1222 = vrot.lane.b32.xlu0 %v2951_v50, %s3102_s8 }
 0xf7b   :  { %v2953_v25 = vpop.eup %2952 }
 0xf7c   :  { %1224 = vrot.lane.b32.xlu1 %v2953_v25, %s3102_s8  ;;  %1231 = vperm.xlu0 %2792, %v3642_v20   ;;  %v2955_v52 = vpop.eup %2954 }
 0xf7d   :  { %v1183_v55 = vadd.f32 1.0, %v2955_v52  ;;  %v2957_v58 = vpop.eup %2956 }
 0xf7e   :  { %v1185_v59 = vadd.f32 1.0, %v2957_v58 }
 0xf7f   :  { %2958 = vrcp.f32 %v1183_v55 }
 0xf80   :  { %1235 = vperm.xlu1 %2793, %v3648_v2   ;;  %2960 = vrcp.f32 %v1185_v59 }
 0xf8c   :  { %v2959_v27 = vpop.eup %2958 }
 0xf8d   :  { %v2961_v20 = vpop.eup %2960 }
 0xfea   :  { %v1223_v62 = vpop.permute.xlu0 %1222 }
 0xfeb   :  { %v3684_v56 = vmul.f32 %v2959_v27, %v1223_v62  ;;  %v1501_v62 = vsub.s32 4, %v3315_v21 }
 0xfed   :  { %2574 = vmatmul.mubr.msk.f32.vlgmr.msra.gmra.mxu1 %vm92_vm0, %v3684_v56 }
 0xfee   :  { %v1225_v23 = vpop.permute.xlu1 %1224  ;;  %1318 = vmatprep.mubr.f32.mxu1 %v3100_v0 }
 0xfef   :  { %v3689_v2 = vmul.f32 %v2961_v20, %v1225_v23 }
 0xff1   :  { %2575 = vmatmul.mubr.msk.f32.gmra.mxu1 %vm92_vm0, %v3689_v2 }
 0xff7   :  { %v1232_v63 = vpop.permute.xlu0 %1231 }
 0xff8   :  { %v1239_v1 = vmul.f32 %v1232_v63, %v3324_v24  ;;  %v1238_v19 = vmul.f32 %v1232_v63, %v3342_v42  ;;  %v1502_v63 = vrot.slane %v3706_v13, %v1501_v62 }
 0xffb   :  { %v1236_v26 = vpop.permute.xlu1 %1235 }
 0xffc   :  { %v1241_v32 = vmul.f32 %v1236_v26, %v3324_v24  ;;  %v1397_v24 = vrot.slane %v3706_v13, %v3339_v41  ;;  %v1449_v41 = vsub.s32 2, %v3315_v21  ;;  %v1240_v38 = vmul.f32 %v1236_v26, %v3342_v42 }
 0xffd   :  { %v1475_v42 = vsub.s32 3, %v3315_v21  ;;  %v3760_v26 = vmul.f32 %v1502_v63, %v3570_v8 }
 0xffe   :  { %v3712_v11 = vmul.f32 %v1397_v24, %v3363_v40 }
 0xfff   :  { %v1476_v27 = vrot.slane %v3706_v13, %v1475_v42 }
0x1001   :  { %v3749_v23 = vmul.f32 %v1476_v27, %v3519_v57 }
0x10ad   :  { %v1314_v54 = vpop.f32.mrf.mxu1 }
0x10ae   :  { %v1325_v61 = vadd.f32 %v1314_v54, %v1238_v19  ;;  %v3757_v54 = vmul.f32 %v1476_v27, %v3513_v28 }
0x10af   :  { %v1316_v30 = vpop.f32.mrf.mxu1 }
0x10b0   :  { %v1326_v3 = vadd.f32 %v1316_v30, %v1239_v1  ;;  %v1329_v48 = vadd.f32 %v1325_v61, %v3346_v45  ;;  %v1527_v1 = vsub.s32 5, %v3315_v21 }
0x10b1   :  { %v1320_v4 = vpop.f32.mrf.mxu1 }
0x10b2   :  { %v3696_v5 = vadd.f32 %v1326_v3, %v3331_v29  ;;  %v1327_v33 = vadd.f32 %v1320_v4, %v1240_v38  ;;  %v2576_v36 = vmul.f32 -1.442695, %v1329_v48  ;;  %v1528_v30 = vrot.slane %v3706_v13, %v1527_v1 }
0x10b3   :  { %v1322_v10 = vpop.f32.mrf.mxu1  ;;  %v3769_v3 = vmul.f32 %v1502_v63, %v3562_v6 }
0x10b4   :  { %v1328_v0 = vadd.f32 %v1322_v10, %v1241_v32  ;;  %2962 = vtanh.f32 %v3696_v5  ;;  %v1331_v37 = vadd.f32 %v1327_v33, %v3346_v45  ;;  %v1399_v45 = vmul.f32 %v1397_v24, %v3369_v34 }
0x10b5   :  { %v1553_v32 = vsub.s32 6, %v3315_v21  ;;  %v3772_v4 = vmul.f32 %v1528_v30, %v3656_v51 }
0x10b6   :  { %v3700_v7 = vadd.f32 %v1328_v0, %v3331_v29  ;;  %v1424_v29 = vrot.slane %v3706_v13, %v3318_v22  ;;  %v1450_v22 = vrot.slane %v3706_v13, %v1449_v41  ;;  %v2578_v43 = vmul.f32 -1.442695, %v1331_v37 }
0x10b7   :  { %v1554_v10 = vrot.slane %v3706_v13, %v1553_v32  ;;  %v3780_v0 = vmul.f32 %v1528_v30, %v3651_v49 }
0x10b8   :  { %2964 = vtanh.f32 %v3700_v7  ;;  %v3720_v14 = vmul.f32 %v1424_v29, %v3413_v60  ;;  %v3726_v16 = vmul.f32 %v1424_v29, %v3419_v53  ;;  %v3732_v17 = vmul.f32 %v1450_v22, %v3469_v31 }
0x10b9   :  { %2966 = vpow2.f32 %v2576_v36  ;;  %v1451_v20 = vmul.f32 %v1450_v22, %v3463_v46  ;;  %v3783_v24 = vmul.f32 %v1554_v10, %v3689_v2  ;;  %v1401_v22 = vsel %vm1400_vm1, %v3712_v11, 0.0 }
0x10ba   :  { %2968 = vpow2.f32 %v2578_v43  ;;  %v1427_v41 = vsel %vm1400_vm1, %v3720_v14, 0.0  ;;  %v2579_v42 = vmul.f32 -1.442695, %v3700_v7  ;;  %v1579_v7 = vsub.s32 7, %v3315_v21 }
0x10c1   :  { %v2963_v9 = vpop.eup %2962 }
0x10c2   :  { %1363 = vrot.lane.b32.xlu1 %v2963_v9, %s3102_s8  ;;  %v3790_v9 = vmul.f32 %v1554_v10, %v3684_v56 }
0x10c5   :  { %v2965_v12 = vpop.eup %2964 }
0x10c6   :  { %1365 = vrot.lane.b32.xlu0 %v2965_v12, %s3102_s8  ;;  %1409 = vrot.lane.b32.xlu1 %v3712_v11, %s3110_s23  ;;  %v2967_v44 = vpop.eup %2966  ;;  %v1404_v11 = vsel %vm1400_vm1, %v1399_v45, 0.0 }
0x10c7   :  { %v1345_v35 = vadd.f32 1.0, %v2967_v44  ;;  %v2969_v50 = vpop.eup %2968 }
0x10c8   :  { %v1347_v25 = vadd.f32 1.0, %v2969_v50 }
0x10c9   :  { %2970 = vrcp.f32 %v1345_v35 }
0x10ca   :  { %1435 = vrot.lane.b32.xlu0 %v3720_v14, %s3110_s23  ;;  %2972 = vrcp.f32 %v1347_v25  ;;  %v1430_v25 = vsel %vm1400_vm1, %v3726_v16, 0.0 }
0x10ce   :  { %1437 = vrot.lane.b32.xlu0 %v3726_v16, %s3110_s23 }
0x10d2   :  { %1463 = vrot.lane.b32.xlu0 %v3732_v17, %s3110_s23 }
0x10d6   :  { %v2971_v15 = vpop.eup %2970 }
0x10d7   :  { %v2973_v55 = vpop.eup %2972  ;;  %v1359_v38 = vmul.f32 %v2971_v15, %v3673_v39 }
0x10d8   :  { %v1360_v37 = vmul.f32 %v2973_v55, %v3677_v47 }
0x1134   :  { %v1364_v18 = vpop.permute.xlu1 %1363 }
0x1135   :  { %v1369_v52 = vmul.f32 %v2971_v15, %v1364_v18  ;;  %v1453_v15 = vsel %vm1400_vm1, %v1451_v20, 0.0 }
0x1137   :  { %1373 = vrot.lane.b32.xlu1 %v1369_v52, %s3102_s8  ;;  %v2577_v52 = vmul.f32 -1.442695, %v3696_v5 }
0x1138   :  { %v1366_v58 = vpop.permute.xlu0 %1365  ;;  %v1410_v29 = vpop.permute.xlu1 %1409 }
0x1139   :  { %v1370_v59 = vmul.f32 %v2973_v55, %v1366_v58  ;;  %v1415_v12 = vsel %vm1400_vm1, %v1410_v29, 0.0 }
0x113b   :  { %1411 = vrot.lane.b32.xlu1 %v1399_v45, %s3110_s23  ;;  %1375 = vrot.lane.b32.xlu0 %v1370_v59, %s3102_s8 }
0x113c   :  { %v1436_v19 = vpop.permute.xlu0 %1435 }
0x113d   :  { %v1441_v39 = vsel %vm1400_vm1, %v1436_v19, 0.0 }
0x113f   :  { %1461 = vrot.lane.b32.xlu1 %v1451_v20, %s3110_s23  ;;  %1489 = vrot.lane.b32.xlu0 %v3749_v23, %s3110_s23 }
0x1140   :  { %v1438_v61 = vpop.permute.xlu0 %1437 }
0x1141   :  { %v1444_v18 = vsel %vm1400_vm1, %v1438_v61, 0.0 }
0x1143   :  { %1487 = vrot.lane.b32.xlu1 %v3757_v54, %s3110_s23  ;;  %1515 = vrot.lane.b32.xlu0 %v3760_v26, %s3110_s23 }
0x1144   :  { %v3800_v48 = vpop.permute.xlu0 %1463 }
0x1147   :  { %1513 = vrot.lane.b32.xlu1 %v3769_v3, %s3110_s23  ;;  %1541 = vrot.lane.b32.xlu0 %v3772_v4, %s3110_s23 }
0x114b   :  { %1539 = vrot.lane.b32.xlu1 %v3780_v0, %s3110_s23  ;;  %1567 = vrot.lane.b32.xlu0 %v3783_v24, %s3110_s23 }
0x114f   :  { %1565 = vrot.lane.b32.xlu1 %v3790_v9, %s3110_s23 }
0x116a   :  { %1416 = vadd.xlane.f32.xlu0 %v1415_v12  ;;  %v1580_v12 = vrot.slane %v3706_v13, %v1579_v7  ;;  %v1456_v13 = vsel %vm1400_vm1, %v3732_v17, 0.0  ;;  %v1505_v17 = vsel %vm1400_vm1, %v3769_v3, 0.0  ;;  %v1534_v3 = vsel %vm1400_vm1, %v3772_v4, 0.0 }
0x116e   :  { %1428 = vadd.xlane.f32.xlu0 %v1427_v41 }
0x1173   :  { %1402 = vadd.xlane.f32.xlu1 %v1401_v22 }
0x11a9   :  { %v1374_v33 = vpop.permute.xlu1 %1373 }
0x11aa   :  { %v1379_v36 = vadd.f32 %v1374_v33, %v1359_v38 }
0x11ac   :  { %2974 = vtanh.f32 %v1379_v36 }
0x11ad   :  { %v1376_v43 = vpop.permute.xlu0 %1375  ;;  %v1412_v50 = vpop.permute.xlu1 %1411 }
0x11ae   :  { %v1380_v44 = vadd.f32 %v1376_v43, %v1360_v37  ;;  %v1418_v47 = vsel %vm1400_vm1, %v1412_v50, 0.0 }
0x11b0   :  { %2976 = vtanh.f32 %v1380_v44  ;;  %v1479_v44 = vsel %vm1400_vm1, %v3757_v54, 0.0  ;;  %v1508_v54 = vsel %vm1400_vm1, %v3760_v26, 0.0  ;;  %v1557_v26 = vsel %vm1400_vm1, %v3790_v9, 0.0 }
0x11b1   :  { %2978 = vpow2.f32 %v2577_v52  ;;  %v1462_v55 = vpop.permute.xlu1 %1461  ;;  %v1490_v58 = vpop.permute.xlu0 %1489 }
0x11b2   :  { %2980 = vpow2.f32 %v2579_v42  ;;  %v1467_v43 = vsel %vm1400_vm1, %v1462_v55, 0.0 }
0x11b5   :  { %v1488_v59 = vpop.permute.xlu1 %1487  ;;  %v1516_v16 = vpop.permute.xlu0 %1515 }
0x11b6   :  { %v1522_v50 = vsel %vm1400_vm1, %v1516_v16, 0.0 }
0x11b9   :  { %v2975_v14 = vpop.eup %2974  ;;  %v1514_v27 = vpop.permute.xlu1 %1513 }
0x11ba   :  { %1385 = vrot.lane.b32.xlu1 %v2975_v14, %s3102_s8  ;;  %v1542_v1 = vpop.permute.xlu0 %1541  ;;  %v1470_v14 = vsel %vm1400_vm1, %v3800_v48, 0.0  ;;  %v1519_v48 = vsel %vm1400_vm1, %v1514_v27, 0.0 }
0x11bd   :  { %v2977_v35 = vpop.eup %2976  ;;  %v1540_v20 = vpop.permute.xlu1 %1539 }
0x11be   :  { %1387 = vrot.lane.b32.xlu0 %v2977_v35, %s3102_s8  ;;  %v2979_v45 = vpop.eup %2978  ;;  %v1568_v32 = vpop.permute.xlu0 %1567  ;;  %v1482_v35 = vsel %vm1400_vm1, %v3749_v23, 0.0  ;;  %v1531_v23 = vsel %vm1400_vm1, %v3780_v0, 0.0  ;;  %v1560_v0 = vsel %vm1400_vm1, %v3783_v24, 0.0 }
0x11bf   :  { %v1346_v62 = vadd.f32 1.0, %v2979_v45  ;;  %v2981_v63 = vpop.eup %2980 }
0x11c0   :  { %v1348_v30 = vadd.f32 1.0, %v2981_v63  ;;  %v1836_v63 = vld [vmem:[%s4279_s7 + $0x40] sm:$0xff] }
0x11c1   :  { %2982 = vrcp.f32 %v1346_v62  ;;  %v1566_v10 = vpop.permute.xlu1 %1565  ;;  %2655 = vmatprep.subr.mxu0 %v1836_v63 }
0x11c2   :  { %2984 = vrcp.f32 %v1348_v30  ;;  %2656 = vmatpush3.msra.mxu0 %v1836_v63 }
0x11ce   :  { %v2983_v41 = vpop.eup %2982 }
0x11cf   :  { %v2985_v33 = vpop.eup %2984 }
0x11dd   :  { %1405 = vadd.xlane.f32.xlu0 %v1404_v11  ;;  %v1493_v11 = vsel %vm1400_vm1, %v1488_v59, 0.0 }
0x11de   :  { %1442 = vadd.xlane.f32.xlu1 %v1441_v39  ;;  %v1496_v39 = vsel %vm1400_vm1, %v1490_v58, 0.0 }
0x11e1   :  { %1431 = vadd.xlane.f32.xlu0 %v1430_v25  ;;  %v1545_v25 = vsel %vm1400_vm1, %v1540_v20, 0.0  ;;  %v1834_v20 = vld [vmem:[%s4279_s7 + $0x30] sm:$0xff] }
0x11e2   :  { %1419 = vadd.xlane.f32.xlu1 %v1418_v47  ;;  %v1548_v47 = vsel %vm1400_vm1, %v1542_v1, 0.0  ;;  %v1835_v1 = vld [vmem:[%s4279_s7 + $0x38] sm:$0xff] }
0x11e3   :  { %2657 = vmatprep.subr.mxu0 %v1835_v1 }
0x11e4   :  { %2658 = vmatpush3.msra.mxu0 %v1835_v1 }
0x11e5   :  { %1454 = vadd.xlane.f32.xlu0 %v1453_v15  ;;  %v1571_v15 = vsel %vm1400_vm1, %v1566_v10, 0.0  ;;  %2659 = vmatprep.subr.mxu0 %v1834_v20  ;;  %v1832_v10 = vld [vmem:[%s4279_s7 + $0x20] sm:$0xff] }
0x11e6   :  { %1445 = vadd.xlane.f32.xlu1 %v1444_v18  ;;  %v1574_v18 = vsel %vm1400_vm1, %v1568_v32, 0.0  ;;  %v1833_v32 = vld [vmem:[%s4279_s7 + $0x28] sm:$0xff]  ;;  %2660 = vmatpush3.msra.mxu0 %v1834_v20 }
0x11e7   :  { %2661 = vmatprep.subr.mxu0 %v1833_v32 }
0x11e8   :  { %2662 = vmatpush3.msra.mxu0 %v1833_v32 }
0x11e9   :  { %2663 = vmatprep.subr.mxu0 %v1832_v10 }
0x11ea   :  { %2664 = vmatpush3.msra.mxu0 %v1832_v10 }
0x11f3   :  { %v3814_v5 = vpop.xlane.xlu0 %1416 }
0x11f7   :  { %v3820_v22 = vpop.xlane.xlu0 %1428 }
0x11fc   :  { %v3817_v29 = vpop.xlane.xlu1 %1402 }
0x122c   :  { %v1386_v19 = vpop.permute.xlu1 %1385 }
0x122d   :  { %v3822_v61 = vmul.f32 %v2983_v41, %v1386_v19  ;;  %v1830_v41 = vld [vmem:[%s4279_s7 + $0x10] sm:$0xff]  ;;  %v1829_v19 = vld [vmem:[%s4279_s7 + $0x8] sm:$0xff] }
0x122f   :  { %v1581_v38 = vmul.f32 %v1580_v12, %v3822_v61 }
0x1230   :  { %v1388_v36 = vpop.permute.xlu0 %1387 }
0x1231   :  { %v3825_v37 = vmul.f32 %v2985_v33, %v1388_v36  ;;  %1591 = vrot.lane.b32.xlu1 %v1581_v38, %s3110_s23  ;;  %v1583_v4 = vsel %vm1400_vm1, %v1581_v38, 0.0  ;;  %v3908_v33 = vld [vmem:[%s4273_s1 + $0x8] sm:$0xff]  ;;  %v3913_v36 = vld [vmem:[%s4273_s1] sm:$0xff] }
0x1233   :  { %v1582_v21 = vmul.f32 %v1580_v12, %v3825_v37  ;;  %v1831_v12 = vld [vmem:[%s4279_s7 + $0x18] sm:$0xff] }
0x1234   :  { %2665 = vmatprep.subr.mxu0 %v1831_v12 }
0x1235   :  { %1593 = vrot.lane.b32.xlu0 %v1582_v21, %s3110_s23  ;;  %v1586_v52 = vsel %vm1400_vm1, %v1582_v21, 0.0  ;;  %2666 = vmatpush3.msra.mxu0 %v1831_v12 }
0x1236   :  { %2667 = vmatprep.subr.mxu0 %v1830_v41 }
0x1237   :  { %2668 = vmatpush3.msra.mxu0 %v1830_v41 }
0x1238   :  { %2669 = vmatprep.subr.mxu0 %v1829_v19 }
0x1239   :  { %2670 = vmatpush3.msra.mxu0 %v1829_v19 }
0x1254   :  { %1457 = vadd.xlane.f32.xlu0 %v1456_v13 }
0x1255   :  { %1468 = vadd.xlane.f32.xlu1 %v1467_v43 }
0x1258   :  { %1480 = vadd.xlane.f32.xlu0 %v1479_v44 }
0x1259   :  { %1471 = vadd.xlane.f32.xlu1 %v1470_v14 }
0x125c   :  { %1483 = vadd.xlane.f32.xlu0 %v1482_v35 }
0x125d   :  { %1494 = vadd.xlane.f32.xlu1 %v1493_v11 }
0x1260   :  { %1506 = vadd.xlane.f32.xlu0 %v1505_v17 }
0x1261   :  { %1497 = vadd.xlane.f32.xlu1 %v1496_v39 }
0x1264   :  { %1509 = vadd.xlane.f32.xlu0 %v1508_v54  ;;  %v1603_v54 = vmax.f32 %v3817_v29, %v3820_v22 }
0x1265   :  { %1520 = vadd.xlane.f32.xlu1 %v1519_v48 }
0x1266   :  { %v3863_v42 = vpop.xlane.xlu0 %1405 }
0x1267   :  { %v3861_v9 = vpop.xlane.xlu1 %1442 }
0x1268   :  { %1532 = vadd.xlane.f32.xlu0 %v1531_v23 }
0x1269   :  { %1523 = vadd.xlane.f32.xlu1 %v1522_v50 }
0x126a   :  { %v3867_v24 = vpop.xlane.xlu0 %1431 }
0x126b   :  { %v3865_v55 = vpop.xlane.xlu1 %1419 }
0x126c   :  { %1535 = vadd.xlane.f32.xlu0 %v1534_v3 }
0x126d   :  { %1546 = vadd.xlane.f32.xlu1 %v1545_v25 }
0x126e   :  { %v3871_v59 = vpop.xlane.xlu0 %1454 }
0x126f   :  { %v3869_v58 = vpop.xlane.xlu1 %1445  ;;  %v1607_v48 = vmax.f32 %v1603_v54, %v3871_v59 }
0x1270   :  { %1558 = vadd.xlane.f32.xlu0 %v1557_v26 }
0x1271   :  { %1549 = vadd.xlane.f32.xlu1 %v1548_v47  ;;  %v1604_v47 = vmax.f32 %v3863_v42, %v3867_v24 }
0x1274   :  { %1561 = vadd.xlane.f32.xlu0 %v1560_v0 }
0x1275   :  { %1572 = vadd.xlane.f32.xlu1 %v1571_v15 }
0x1278   :  { %1584 = vadd.xlane.f32.xlu0 %v1583_v4 }
0x1279   :  { %1575 = vadd.xlane.f32.xlu1 %v1574_v18 }
0x127c   :  { %1587 = vadd.xlane.f32.xlu0 %v1586_v52 }
0x1292   :  { %1929 = vrot.lane.b32.xlu0 %v3913_v36, %s3111_s21 }
0x12a3   :  { %v1592_v16 = vpop.permute.xlu1 %1591 }
0x12a4   :  { %v1597_v45 = vsel %vm1400_vm1, %v1592_v16, 0.0 }
0x12a5   :  { %1598 = vadd.xlane.f32.xlu1 %v1597_v45 }
0x12a7   :  { %v1594_v27 = vpop.permute.xlu0 %1593 }
0x12a8   :  { %v1600_v62 = vsel %vm1400_vm1, %v1594_v27, 0.0 }
0x12a9   :  { %1601 = vadd.xlane.f32.xlu1 %v1600_v62 }
0x12ba   :  { %1931 = vrot.lane.b32.xlu1 %v3908_v33, %s3111_s21 }
0x12dd   :  { %v3884_v30 = vpop.xlane.xlu0 %1457 }
0x12de   :  { %v3917_v13 = vpop.xlane.xlu1 %1468  ;;  %v1608_v18 = vmax.f32 %v1604_v47, %v3884_v30 }
0x12e1   :  { %v3892_v7 = vpop.xlane.xlu0 %1480 }
0x12e2   :  { %v3921_v44 = vpop.xlane.xlu1 %1471  ;;  %v1611_v3 = vmax.f32 %v1607_v48, %v3892_v7 }
0x12e5   :  { %v3903_v38 = vpop.xlane.xlu0 %1483 }
0x12e6   :  { %v3923_v35 = vpop.xlane.xlu1 %1494  ;;  %v1612_v16 = vmax.f32 %v1608_v18, %v3903_v38 }
0x12e9   :  { %v1507_v21 = vpop.xlane.xlu0 %1506 }
0x12ea   :  { %v3927_v17 = vpop.xlane.xlu1 %1497  ;;  %v1615_v25 = vmax.f32 %v1611_v3, %v1507_v21 }
0x12ed   :  { %v3919_v43 = vpop.xlane.xlu0 %1509 }
0x12ee   :  { %v3932_v23 = vpop.xlane.xlu1 %1520  ;;  %v1616_v45 = vmax.f32 %v1612_v16, %v3919_v43 }
0x12f1   :  { %v1533_v14 = vpop.xlane.xlu0 %1532 }
0x12f2   :  { %v1619_v26 = vmax.f32 %v1615_v25, %v1533_v14  ;;  %v3939_v0 = vpop.xlane.xlu1 %1523 }
0x12f5   :  { %v3925_v11 = vpop.xlane.xlu0 %1535 }
0x12f6   :  { %v3944_v27 = vpop.xlane.xlu1 %1546  ;;  %v1620_v63 = vmax.f32 %v1616_v45, %v3925_v11 }
0x12f9   :  { %v1559_v39 = vpop.xlane.xlu0 %1558 }
0x12fa   :  { %v1623_v4 = vmax.f32 %v1619_v26, %v1559_v39  ;;  %v3952_v12 = vpop.xlane.xlu1 %1549 }
0x12fd   :  { %v3934_v50 = vpop.xlane.xlu0 %1561 }
0x12fe   :  { %v1624_v32 = vmax.f32 %v1620_v63, %v3934_v50  ;;  %v3964_v3 = vpop.xlane.xlu1 %1572 }
0x1301   :  { %v1585_v15 = vpop.xlane.xlu0 %1584 }
0x1302   :  { %v1627_v52 = vmax.f32 %v1623_v4, %v1585_v15 }
0x1304   :  { %v1631_v62 = vsub.f32 %v3817_v29, %v1627_v52  ;;  %v1637_v1 = vsub.f32 %v3820_v22, %v1627_v52  ;;  %v1643_v54 = vsub.f32 %v3871_v59, %v1627_v52  ;;  %v1605_v22 = vmax.f32 %v3814_v5, %v3861_v9 }
0x1305   :  { %v3949_v20 = vpop.xlane.xlu0 %1587  ;;  %v1649_v25 = vsub.f32 %v3892_v7, %v1627_v52  ;;  %v1655_v4 = vsub.f32 %v1507_v21, %v1627_v52  ;;  %v1606_v59 = vmax.f32 %v3865_v55, %v3869_v58  ;;  %v1661_v18 = vsub.f32 %v1533_v14, %v1627_v52  ;;  %v3976_v14 = vpop.xlane.xlu1 %1575 }
0x1306   :  { %v1633_v10 = vmul.f32 1.442695, %v1631_v62  ;;  %v1639_v41 = vmul.f32 1.442695, %v1637_v1  ;;  %v3955_v19 = vmax.f32 %v1624_v32, %v3949_v20  ;;  %v1609_v26 = vmax.f32 %v1605_v22, %v3917_v13 }
0x1307   :  { %v1645_v47 = vmul.f32 1.442695, %v1643_v54  ;;  %v1667_v45 = vsub.f32 %v1559_v39, %v1627_v52  ;;  %v1610_v63 = vmax.f32 %v1606_v59, %v3921_v44  ;;  %v1673_v1 = vsub.f32 %v1585_v15, %v1627_v52 }
0x1308   :  { %2986 = vpow2.f32 %v1633_v10  ;;  %v1632_v29 = vsub.f32 %v3863_v42, %v3955_v19  ;;  %v1638_v48 = vsub.f32 %v3867_v24, %v3955_v19  ;;  %v1613_v42 = vmax.f32 %v1609_v26, %v3923_v35 }
0x1309   :  { %2988 = vpow2.f32 %v1639_v41  ;;  %v1651_v24 = vmul.f32 1.442695, %v1649_v25  ;;  %v1657_v7 = vmul.f32 1.442695, %v1655_v4  ;;  %v1644_v21 = vsub.f32 %v3884_v30, %v3955_v19 }
0x130a   :  { %v1635_v16 = vmul.f32 1.442695, %v1632_v29  ;;  %v1641_v62 = vmul.f32 1.442695, %v1638_v48  ;;  %v1617_v32 = vmax.f32 %v1613_v42, %v3932_v23  ;;  %2990 = vpow2.f32 %v1645_v47 }
0x130b   :  { %v1614_v10 = vmax.f32 %v1610_v63, %v3927_v17  ;;  %v1663_v41 = vmul.f32 1.442695, %v1661_v18  ;;  %v1650_v39 = vsub.f32 %v3903_v38, %v3955_v19  ;;  %v1669_v29 = vmul.f32 1.442695, %v1667_v45 }
0x130c   :  { %2992 = vpow2.f32 %v1635_v16  ;;  %v1621_v54 = vmax.f32 %v1617_v32, %v3944_v27  ;;  %v1675_v52 = vmul.f32 1.442695, %v1673_v1  ;;  %v1656_v30 = vsub.f32 %v3919_v43, %v3955_v19 }
0x130d   :  { %2994 = vpow2.f32 %v1641_v62  ;;  %v1618_v15 = vmax.f32 %v1614_v10, %v3939_v0  ;;  %v1647_v48 = vmul.f32 1.442695, %v1644_v21  ;;  %v1653_v38 = vmul.f32 1.442695, %v1650_v39 }
0x130e   :  { %2996 = vpow2.f32 %v1651_v24  ;;  %v1625_v22 = vmax.f32 %v1621_v54, %v3964_v3  ;;  %v1662_v47 = vsub.f32 %v3925_v11, %v3955_v19  ;;  %v1659_v16 = vmul.f32 1.442695, %v1656_v30 }
0x130f   :  { %2998 = vpow2.f32 %v1657_v7  ;;  %v1622_v26 = vmax.f32 %v1618_v15, %v3952_v12  ;;  %v1668_v42 = vsub.f32 %v3934_v50, %v3955_v19 }
0x1310   :  { %3000 = vpow2.f32 %v1663_v41  ;;  %v1665_v24 = vmul.f32 1.442695, %v1662_v47 }
0x1311   :  { %3002 = vpow2.f32 %v1669_v29  ;;  %v1626_v43 = vmax.f32 %v1622_v26, %v3976_v14 }
0x1312   :  { %3004 = vpow2.f32 %v1675_v52 }
0x1313   :  { %3006 = vpow2.f32 %v1647_v48 }
0x1314   :  { %3008 = vpow2.f32 %v1653_v38 }
0x1315   :  { %v3985_v25 = vpop.eup %2986  ;;  %3010 = vpow2.f32 %v1659_v16 }
0x1316   :  { %v3990_v59 = vpop.eup %2988 }
0x1317   :  { %v1727_v11 = vadd.f32 %v3990_v59, %v3985_v25  ;;  %v4010_v39 = vpop.eup %2990 }
0x1319   :  { %v1731_v29 = vadd.f32 %v4010_v39, %v1727_v11 }
0x132e   :  { %v1599_v4 = vpop.xlane.xlu1 %1598 }
0x132f   :  { %v1629_v18 = vmax.f32 %v1625_v22, %v1599_v4 }
0x1331   :  { %v1679_v45 = vsub.f32 %v3814_v5, %v1629_v18  ;;  %v1685_v62 = vsub.f32 %v3861_v9, %v1629_v18  ;;  %v1691_v63 = vsub.f32 %v3917_v13, %v1629_v18  ;;  %v1697_v1 = vsub.f32 %v3923_v35, %v1629_v18 }
0x1332   :  { %v4001_v32 = vpop.xlane.xlu1 %1601  ;;  %v1703_v50 = vsub.f32 %v3932_v23, %v1629_v18  ;;  %v1709_v9 = vsub.f32 %v3944_v27, %v1629_v18  ;;  %v1671_v13 = vmul.f32 1.442695, %v1668_v42  ;;  %v4014_v23 = vpop.eup %2992  ;;  %v1715_v27 = vsub.f32 %v3964_v3, %v1629_v18 }
0x1333   :  { %v1681_v7 = vmul.f32 1.442695, %v1679_v45  ;;  %v1687_v21 = vmul.f32 1.442695, %v1685_v62  ;;  %v4005_v10 = vmax.f32 %v1626_v43, %v4001_v32  ;;  %v1693_v5 = vmul.f32 1.442695, %v1691_v63  ;;  %v4018_v52 = vpop.eup %2994 }
0x1334   :  { %v1699_v35 = vmul.f32 1.442695, %v1697_v1  ;;  %v1705_v15 = vmul.f32 1.442695, %v1703_v50  ;;  %v1711_v30 = vmul.f32 1.442695, %v1709_v9  ;;  %v4022_v22 = vpop.eup %2996  ;;  %v1721_v48 = vsub.f32 %v1599_v4, %v1629_v18 }
0x1335   :  { %3012 = vpow2.f32 %v1681_v7  ;;  %v1680_v41 = vsub.f32 %v3865_v55, %v4005_v10  ;;  %v1686_v54 = vsub.f32 %v3869_v58, %v4005_v10  ;;  %v1692_v55 = vsub.f32 %v3921_v44, %v4005_v10  ;;  %v4024_v26 = vpop.eup %2998 }
0x1336   :  { %3014 = vpow2.f32 %v1687_v21  ;;  %v1698_v47 = vsub.f32 %v3927_v17, %v4005_v10  ;;  %v4028_v3 = vpop.eup %3000  ;;  %v1735_v43 = vadd.f32 %v4022_v22, %v1731_v29  ;;  %v1728_v16 = vadd.f32 %v4018_v52, %v4014_v23 }
0x1337   :  { %3016 = vpow2.f32 %v1665_v24  ;;  %v1683_v58 = vmul.f32 1.442695, %v1680_v41  ;;  %v1689_v38 = vmul.f32 1.442695, %v1686_v54  ;;  %v1717_v44 = vmul.f32 1.442695, %v1715_v27  ;;  %v4033_v42 = vpop.eup %3002 }
0x1338   :  { %3018 = vpow2.f32 %v1693_v5  ;;  %v1695_v4 = vmul.f32 1.442695, %v1692_v55  ;;  %v1704_v18 = vsub.f32 %v3939_v0, %v4005_v10  ;;  %v4037_v45 = vpop.eup %3004  ;;  %v1674_v17 = vsub.f32 %v3949_v20, %v3955_v19 }
0x1339   :  { %3020 = vpow2.f32 %v1671_v13  ;;  %v1723_v62 = vmul.f32 1.442695, %v1721_v48  ;;  %v4041_v63 = vpop.eup %3006  ;;  %v1701_v11 = vmul.f32 1.442695, %v1698_v47  ;;  %v1710_v24 = vsub.f32 %v3952_v12, %v4005_v10 }
0x133a   :  { %3022 = vpow2.f32 %v1699_v35  ;;  %v4045_v1 = vpop.eup %3008  ;;  %v1739_v7 = vadd.f32 %v4024_v26, %v1735_v43  ;;  %v1732_v0 = vadd.f32 %v4041_v63, %v1728_v16  ;;  %v1707_v21 = vmul.f32 1.442695, %v1704_v18 }
0x133b   :  { %3024 = vpow2.f32 %v1705_v15  ;;  %v1716_v20 = vsub.f32 %v3976_v14, %v4005_v10  ;;  %v4051_v19 = vpop.eup %3010  ;;  %v1677_v50 = vmul.f32 1.442695, %v1674_v17  ;;  %v1755_v5 = vmul.f32 %v3985_v25, %v3363_v40 }
0x133c   :  { %3026 = vpow2.f32 %v1711_v30  ;;  %v1763_v12 = vmul.f32 %v3990_v59, %v3413_v60  ;;  %v1713_v13 = vmul.f32 1.442695, %v1710_v24  ;;  %v1722_v41 = vsub.f32 %v4001_v32, %v4005_v10 }
0x133d   :  { %3028 = vpow2.f32 %v1683_v58  ;;  %v1743_v54 = vadd.f32 %v4028_v3, %v1739_v7  ;;  %v1736_v14 = vadd.f32 %v4045_v1, %v1732_v0  ;;  %v1719_v25 = vmul.f32 1.442695, %v1716_v20 }
0x133e   :  { %3030 = vpow2.f32 %v1689_v38  ;;  %v1765_v55 = vadd.f32 %v1763_v12, %v1755_v5  ;;  %v1725_v10 = vmul.f32 1.442695, %v1722_v41  ;;  %v1771_v43 = vmul.f32 %v4010_v39, %v3463_v46 }
0x133f   :  { %3032 = vpow2.f32 %v1717_v44  ;;  %v1747_v47 = vadd.f32 %v4033_v42, %v1743_v54  ;;  %v1756_v17 = vmul.f32 %v4014_v23, %v3369_v34 }
0x1340   :  { %3034 = vpow2.f32 %v1695_v4  ;;  %v1773_v18 = vadd.f32 %v1771_v43, %v1765_v55 }
0x1341   :  { %3036 = vpow2.f32 %v1723_v62  ;;  %v1764_v62 = vmul.f32 %v4018_v52, %v3419_v53  ;;  %v1751_v39 = vadd.f32 %v4037_v45, %v1747_v47 }
0x1342   :  { %v3013_v9 = vpop.eup %3012  ;;  %3038 = vpow2.f32 %v1701_v11 }
0x1343   :  { %v3015_v35 = vpop.eup %3014  ;;  %v1759_v29 = vmul.f32 %v3013_v9, %v3363_v40  ;;  %3040 = vpow2.f32 %v1707_v21  ;;  %v1740_v40 = vadd.f32 %v4051_v19, %v1736_v14  ;;  %v1766_v41 = vadd.f32 %v1764_v62, %v1756_v17 }
0x1344   :  { %v4062_v15 = vpop.eup %3016  ;;  %v1729_v27 = vadd.f32 %v3015_v35, %v3013_v9  ;;  %v1767_v59 = vmul.f32 %v3015_v35, %v3413_v60  ;;  %3042 = vpow2.f32 %v1677_v50 }
0x1345   :  { %v3019_v30 = vpop.eup %3018  ;;  %3044 = vpow2.f32 %v1713_v13  ;;  %v1744_v21 = vadd.f32 %v4062_v15, %v1740_v40 }
0x1346   :  { %v4065_v48 = vpop.eup %3020  ;;  %v1733_v32 = vadd.f32 %v3019_v30, %v1729_v27  ;;  %v1769_v58 = vadd.f32 %v1767_v59, %v1759_v29  ;;  %3046 = vpow2.f32 %v1719_v25  ;;  %v1775_v60 = vmul.f32 %v3019_v30, %v3463_v46 }
0x1347   :  { %v3023_v38 = vpop.eup %3022  ;;  %3048 = vpow2.f32 %v1725_v10  ;;  %v1779_v46 = vmul.f32 %v4022_v22, %v3513_v28  ;;  %v1748_v22 = vadd.f32 %v4065_v48, %v1744_v21 }
0x1348   :  { %v3025_v16 = vpop.eup %3024  ;;  %v1737_v44 = vadd.f32 %v3023_v38, %v1733_v32  ;;  %v1777_v7 = vadd.f32 %v1775_v60, %v1769_v58  ;;  %v1783_v12 = vmul.f32 %v3023_v38, %v3513_v28  ;;  %3050 = vrcp.f32 %v1751_v39 }
0x1349   :  { %v3027_v4 = vpop.eup %3026  ;;  %v1781_v13 = vadd.f32 %v1779_v46, %v1773_v18  ;;  %v1772_v28 = vmul.f32 %v4041_v63, %v3469_v31  ;;  %v1791_v30 = vmul.f32 %v3025_v16, %v3562_v6  ;;  %v1780_v63 = vmul.f32 %v4045_v1, %v3519_v57 }
0x134a   :  { %v3029_v11 = vpop.eup %3028  ;;  %v1741_v24 = vadd.f32 %v3025_v16, %v1737_v44  ;;  %v1785_v29 = vadd.f32 %v1783_v12, %v1777_v7  ;;  %v1803_v39 = vmul.f32 %v4033_v42, %v3684_v56 }
0x134b   :  { %v3031_v0 = vpop.eup %3030  ;;  %v1760_v20 = vmul.f32 %v3029_v11, %v3369_v34  ;;  %v1787_v34 = vmul.f32 %v4024_v26, %v3562_v6  ;;  %v1774_v58 = vadd.f32 %v1772_v28, %v1766_v41  ;;  %v1795_v26 = vmul.f32 %v4028_v3, %v3651_v49 }
0x134c   :  { %v3033_v50 = vpop.eup %3032  ;;  %v1745_v5 = vadd.f32 %v3027_v4, %v1741_v24  ;;  %v1730_v23 = vadd.f32 %v3031_v0, %v3029_v11  ;;  %v1768_v52 = vmul.f32 %v3031_v0, %v3419_v53  ;;  %v1793_v40 = vadd.f32 %v1791_v30, %v1785_v29  ;;  %v1967_v30 = vld [vmem:[%s4279_s7 + $0x68] sm:$0xff] }
0x134d   :  { %v3035_v9 = vpop.eup %3034  ;;  %v1789_v10 = vadd.f32 %v1787_v34, %v1781_v13  ;;  %v1799_v6 = vmul.f32 %v3027_v4, %v3651_v49  ;;  %v1782_v24 = vadd.f32 %v1780_v63, %v1774_v58  ;;  %v1788_v3 = vmul.f32 %v4051_v19, %v3570_v8  ;;  %v1964_v58 = vld [vmem:[%s4279_s7 + $0x50] sm:$0xff] }
0x134e   :  { %v3037_v35 = vpop.eup %3036  ;;  %v1749_v54 = vadd.f32 %v3033_v50, %v1745_v5  ;;  %v1734_v14 = vadd.f32 %v3035_v9, %v1730_v23  ;;  %v1770_v27 = vadd.f32 %v1768_v52, %v1760_v20  ;;  %v1776_v55 = vmul.f32 %v3035_v9, %v3469_v31 }
0x134f   :  { %v3039_v25 = vpop.eup %3038  ;;  %v1797_v17 = vadd.f32 %v1795_v26, %v1789_v10  ;;  %v1801_v11 = vadd.f32 %v1799_v6, %v1793_v40  ;;  %v1807_v21 = vmul.f32 %v3033_v50, %v3684_v56  ;;  %v1790_v46 = vadd.f32 %v1788_v3, %v1782_v24  ;;  %v2580_v10 = vld [vmem:[%s4279_s7 + $0x130] ss:$0 sm:$0xff]  ;;  %v1957_v24 = vld [vmem:[%s4276_s4] sm:$0xff] }
0x1350   :  { %v1753_v59 = vadd.f32 %v3037_v35, %v1749_v54  ;;  %v1738_v53 = vadd.f32 %v3039_v25, %v1734_v14  ;;  %v3041_v32 = vpop.eup %3040  ;;  %v1778_v43 = vadd.f32 %v1776_v55, %v1770_v27  ;;  %v1784_v31 = vmul.f32 %v3039_v25, %v3519_v57  ;;  %v1966_v55 = vld [vmem:[%s4279_s7 + $0x60] sm:$0xff] }
0x1351   :  { %v3043_v38 = vpop.eup %3042  ;;  %v1792_v49 = vmul.f32 %v3041_v32, %v3570_v8  ;;  %v1805_v57 = vadd.f32 %v1803_v39, %v1797_v17  ;;  %v1809_v4 = vadd.f32 %v1807_v21, %v1801_v11  ;;  %v1811_v23 = vmul.f32 %v4037_v45, %v3822_v61  ;;  %v1961_v21 = vld [vmem:[#allocation2] sm:$0xff] }
0x1352   :  { %3052 = vrcp.f32 %v1753_v59  ;;  %v1742_v47 = vadd.f32 %v3041_v32, %v1738_v53  ;;  %v3045_v44 = vpop.eup %3044  ;;  %v1752_v60 = vadd.f32 %v3043_v38, %v1748_v22  ;;  %v1786_v7 = vadd.f32 %v1784_v31, %v1778_v43  ;;  %v1970_v59 = vld [vmem:[%s4279_s7 + $0x80] sm:$0xff]  ;;  %v1968_v53 = vld [vmem:[%s4279_s7 + $0x70] sm:$0xff]  ;;  %v1965_v32 = vld [vmem:[%s4279_s7 + $0x58] sm:$0xff] }
0x1353   :  { %v3047_v16 = vpop.eup %3046  ;;  %v1815_v42 = vmul.f32 %v3037_v35, %v3822_v61  ;;  %v1796_v19 = vmul.f32 %v4062_v15, %v3656_v51  ;;  %v1800_v12 = vmul.f32 %v3045_v44, %v3656_v51  ;;  %v1813_v52 = vadd.f32 %v1811_v23, %v1805_v57  ;;  %v2149_v23 = vld [vmem:[%s4279_s7 + $0xb0] sm:$0xff] }
0x1354   :  { %v1746_v18 = vadd.f32 %v3045_v44, %v1742_v47  ;;  %v3049_v0 = vpop.eup %3048  ;;  %3054 = vrcp.f32 %v1752_v60  ;;  %v1794_v20 = vadd.f32 %v1792_v49, %v1786_v7  ;;  %v1804_v54 = vmul.f32 %v4065_v48, %v3689_v2  ;;  %v1930_v60 = vpop.permute.xlu0 %1929 }
0x1355   :  { %v3051_v5 = vpop.eup %3050  ;;  %v1817_v56 = vadd.f32 %v1815_v42, %v1809_v4  ;;  %v1798_v50 = vadd.f32 %v1796_v19, %v1790_v46  ;;  %v1808_v14 = vmul.f32 %v3047_v16, %v3689_v2  ;;  %v1812_v51 = vmul.f32 %v3043_v38, %v3825_v37  ;;  %v1971_v2 = vld [vmem:[%s4279_s7 + $0x88] sm:$0xff]  ;;  %v2147_v19 = vld [vmem:[%s4279_s7 + $0xa0] sm:$0xff] }
0x1356   :  { %v1750_v62 = vadd.f32 %v3047_v16, %v1746_v18  ;;  %v1802_v8 = vadd.f32 %v1800_v12, %v1794_v20  ;;  %v1820_v13 = vmul.f32 %v3051_v5, %v1813_v52  ;;  %v1816_v15 = vmul.f32 %v3049_v0, %v3825_v37  ;;  %2674 = vmatprep.subr.mxu1 %v1971_v2  ;;  %v1969_v37 = vld [vmem:[%s4279_s7 + $0x78] sm:$0xff]  ;;  %v1963_v38 = vld [vmem:[%s4279_s7 + $0x48] sm:$0xff]  ;;  %v1932_v18 = vpop.permute.xlu1 %1931  ;;  %v2151_v20 = vld [vmem:[%s4279_s7 + $0xc0] sm:$0xff] }
0x1357   :  { %v1806_v61 = vadd.f32 %v1804_v54, %v1798_v50  ;;  %2675 = vmatpush3.msra.mxu1 %v1971_v2  ;;  %v1962_v4 = vld [vmem:[#allocation2 + $0x8] sm:$0xff]  ;;  %v2150_v5 = vld [vmem:[%s4279_s7 + $0xb8] sm:$0xff]  ;;  %v2145_v52 = vld [vmem:[%s4279_s7 + $0x90] sm:$0xff] }
0x1358   :  { %v1754_v1 = vadd.f32 %v3049_v0, %v1750_v62  ;;  %v1810_v35 = vadd.f32 %v1808_v14, %v1802_v8  ;;  %2676 = vmatprep.subr.mxu1 %v1970_v59  ;;  %v2152_v46 = vld [vmem:[%s4279_s7 + $0xc8] sm:$0xff]  ;;  %v2146_v12 = vld [vmem:[%s4279_s7 + $0x98] sm:$0xff] }
0x1359   :  { %v1814_v27 = vadd.f32 %v1812_v51, %v1806_v61  ;;  %2677 = vmatpush3.msra.mxu1 %v1970_v59  ;;  %v2148_v42 = vld [vmem:[%s4279_s7 + $0xa8] sm:$0xff]  ;;  %v2314_v51 = vld [vmem:[%s4275_s3] sm:$0xff] }
0x135a   :  { %3056 = vrcp.f32 %v1754_v1  ;;  %v1818_v25 = vadd.f32 %v1816_v15, %v1810_v35  ;;  %2678 = vmatprep.subr.mxu1 %v1969_v37  ;;  %v2590_v15 = vld [vmem:[%s4279_s7 + $0x132] ss:$0 sm:$0xff]  ;;  %v2426_v2 = vld [vmem:[%s4279_s7 + $0x128] sm:$0xff]  ;;  %v2425_v59 = vld [vmem:[%s4279_s7 + $0x120] sm:$0xff] }
0x135b   :  { %2679 = vmatpush3.msra.mxu1 %v1969_v37  ;;  %v2424_v37 = vld [vmem:[%s4279_s7 + $0x118] sm:$0xff] }
0x135c   :  { %2680 = vmatprep.subr.mxu1 %v1968_v53 }
0x135d   :  { %2681 = vmatpush3.msra.mxu1 %v1968_v53  ;;  %v2423_v53 = vld [vmem:[%s4279_s7 + $0x110] sm:$0xff] }
0x135e   :  { %2682 = vmatprep.subr.mxu1 %v1967_v30 }
0x135f   :  { %v3053_v9 = vpop.eup %3052  ;;  %2683 = vmatpush3.msra.mxu1 %v1967_v30  ;;  %v2422_v30 = vld [vmem:[%s4279_s7 + $0x108] sm:$0xff] }
0x1360   :  { %v1824_v41 = vmul.f32 %v3053_v9, %v1817_v56  ;;  %2684 = vmatprep.subr.mxu1 %v1966_v55  ;;  %v2585_v56 = vld [vmem:[%s4279_s7 + $0x131] ss:$0 sm:$0xff] }
0x1361   :  { %v3055_v29 = vpop.eup %3054  ;;  %2685 = vmatpush3.msra.mxu1 %v1966_v55  ;;  %v2421_v55 = vld [vmem:[%s4279_s7 + $0x100] sm:$0xff] }
0x1362   :  { %v1827_v45 = vsel %vm1400_vm1, %v1820_v13, %v1824_v41  ;;  %v1822_v34 = vmul.f32 %v3055_v29, %v1814_v27  ;;  %2686 = vmatprep.subr.mxu1 %v1965_v32  ;;  %v2141_v13 = vld [vmem:[%s4277_s5] sm:$0xff]  ;;  %v2142_v41 = vld [vmem:[%s4277_s5 + $0x8] sm:$0xff] }
0x1363   :  { %2671 = vmatprep.mubr.msk.f32.mxu0 %vm92_vm0, %v1827_v45  ;;  %2687 = vmatpush3.msra.mxu1 %v1965_v32  ;;  %v2420_v32 = vld [vmem:[%s4279_s7 + $0xf8] sm:$0xff] }
0x1364   :  { %2688 = vmatprep.subr.mxu1 %v1964_v58 }
0x1365   :  { %2689 = vmatpush3.msra.mxu1 %v1964_v58  ;;  %v2418_v58 = vld [vmem:[%s4279_s7 + $0xe8] sm:$0xff] }
0x1366   :  { %2690 = vmatprep.subr.mxu1 %v1963_v38 }
0x1367   :  { %v3057_v22 = vpop.eup %3056  ;;  %2691 = vmatpush3.msra.mxu1 %v1963_v38  ;;  %v2417_v38 = vld [vmem:[%s4279_s7 + $0xe0] sm:$0xff] }
0x1368   :  { %v1826_v28 = vmul.f32 %v3057_v22, %v1818_v25 }
0x136a   :  { %v1828_v48 = vsel %vm1400_vm1, %v1822_v34, %v1826_v28 }
0x136b   :  { %2672 = vmatmul.mubr.msk.f32.vlgmr.msra.gmra.mxu0 %vm92_vm0, %v1828_v48  ;;  %v2315_v48 = vld [vmem:[%s4275_s3 + $0x8] sm:$0xff] }
0x136c   :  { %2732 = vmatprep.mubr.msk.f32.mxu0 %vm2059_vm5, %v2314_v51 }
0x142b   :  { %v2673_v47 = vpop.f32.mrf.mxu0 }
0x142c   :  { %v1920_v40 = vadd.f32 %v2673_v47, %v2580_v10  ;;  %v2416_v47 = vld [vmem:[%s4279_s7 + $0xd8] sm:$0xff] }
0x142d   :  { %v1914_v43 = vpop.f32.mrf.mxu0 }
0x142e   :  { %v1924_v44 = vmax.f32 %v1920_v40, 0.0  ;;  %v1915_v26 = vadd.f32 %v2580_v10, %v1914_v43  ;;  %v2419_v10 = vld [vmem:[%s4279_s7 + $0xf0] sm:$0xff] }
0x142f   :  { %v2415_v40 = vld [vmem:[%s4279_s7 + $0xd0] sm:$0xff] }
0x1430   :  { %v1923_v63 = vmax.f32 %v1915_v26, 0.0  ;;  %1939 = vrot.lane.b32.xlu0 %v1924_v44, %s3112_s6  ;;  %v1950_v16 = vsel %vm1400_vm1, %v1924_v44, %v1932_v18 }
0x1432   :  { %1937 = vrot.lane.b32.xlu1 %v1923_v63, %s3112_s6  ;;  %v1949_v62 = vsel %vm1400_vm1, %v1923_v63, %v1930_v60 }
0x1434   :  { %1945 = vrot.lane.b32.xlu0 %v3908_v33, %s3113_s2  ;;  %v1958_v33 = vld [vmem:[%s4276_s4 + $0x8] sm:$0xff] }
0x1436   :  { %1943 = vrot.lane.b32.xlu1 %v3913_v36, %s3113_s2 }
0x14a2   :  { %v1940_v6 = vpop.permute.xlu0 %1939 }
0x14a3   :  { %v1953_v11 = vsel %vm1951_vm2, %v1950_v16, %v1940_v6  ;;  %v2595_v6 = vld [vmem:[%s4279_s7 + $0x133] ss:$0 sm:$0xff] }
0x14a4   :  { %v1938_v31 = vpop.permute.xlu1 %1937 }
0x14a5   :  { %v1952_v7 = vsel %vm1951_vm2, %v1949_v62, %v1938_v31 }
0x14a6   :  { %v1946_v17 = vpop.permute.xlu0 %1945 }
0x14a7   :  { %v1956_v36 = vsel %vm1954_vm3, %v1953_v11, %v1946_v17 }
0x14a8   :  { %v1944_v0 = vpop.permute.xlu1 %1943  ;;  %v1960_v1 = vmul.f32 %v1958_v33, %v1956_v36 }
0x14a9   :  { %v1955_v39 = vsel %vm1954_vm3, %v1952_v7, %v1944_v0 }
0x14aa   :  { %v1959_v3 = vmul.f32 %v1957_v24, %v1955_v39 }
0x14ac   :  { %2692 = vmatprep.mubr.msk.f32.mxu1 %vm1973_vm4, %v1959_v3 }
0x14ad   :  { %2693 = vmatmul.mubr.msk.f32.vlgmr.msra.gmra.mxu1 %vm1973_vm4, %v1960_v1 }
0x14ae   :  { %2699 = vmatprep.mubr.msk.f32.mxu1 %vm2059_vm5, %v1961_v21 }
0x156d   :  { %v2694_v49 = vpop.f32.mrf.mxu1 }
0x156e   :  { %2695 = vmatprep.subr.mxu1 %v2694_v49 }
0x156f   :  { %v2046_v57 = vpop.f32.mrf.mxu1  ;;  %2696 = vmatpush3.msra.mxu1 %v2694_v49 }
0x1570   :  { %2697 = vmatprep.subr.mxu1 %v2046_v57 }
0x1571   :  { %2698 = vmatpush3.msra.mxu1 %v2046_v57 }
0x1572   :  { %2700 = vmatmul.mubr.msk.f32.vlgmr.msra.gmra.mxu1 %vm2059_vm5, %v1962_v4  ;;  %2702 = vmatprep.subr.mxu1 %v2152_v46 }
0x1573   :  { %2703 = vmatpush3.msra.mxu1 %v2152_v46 }
0x1574   :  { %2704 = vmatprep.subr.mxu1 %v2151_v20 }
0x1575   :  { %2705 = vmatpush3.msra.mxu1 %v2151_v20 }
0x1576   :  { %2706 = vmatprep.subr.mxu1 %v2150_v5 }
0x1577   :  { %2707 = vmatpush3.msra.mxu1 %v2150_v5 }
0x1578   :  { %2708 = vmatprep.subr.mxu1 %v2149_v23 }
0x1579   :  { %2709 = vmatpush3.msra.mxu1 %v2149_v23 }
0x157a   :  { %2710 = vmatprep.subr.mxu1 %v2148_v42 }
0x157b   :  { %2711 = vmatpush3.msra.mxu1 %v2148_v42 }
0x157c   :  { %2712 = vmatprep.subr.mxu1 %v2147_v19 }
0x157d   :  { %2713 = vmatpush3.msra.mxu1 %v2147_v19 }
0x157e   :  { %2714 = vmatprep.subr.mxu1 %v2146_v12 }
0x157f   :  { %2715 = vmatpush3.msra.mxu1 %v2146_v12 }
0x1580   :  { %2716 = vmatprep.subr.mxu1 %v2145_v52 }
0x1581   :  { %2717 = vmatpush3.msra.mxu1 %v2145_v52 }
0x1632   :  { %v2701_v50 = vpop.f32.mrf.mxu1 }
0x1633   :  { %v2138_v8 = vadd.f32 %v2701_v50, %v2585_v56 }
0x1634   :  { %v2132_v9 = vpop.f32.mrf.mxu1 }
0x1635   :  { %v2133_v54 = vadd.f32 %v2585_v56, %v2132_v9  ;;  %v2144_v45 = vmul.f32 %v2142_v41, %v2138_v8 }
0x1637   :  { %v2143_v14 = vmul.f32 %v2141_v13, %v2133_v54 }
0x1639   :  { %2718 = vmatprep.mubr.msk.f32.mxu1 %vm92_vm0, %v2143_v14 }
0x163a   :  { %2719 = vmatmul.mubr.msk.f32.vlgmr.msra.gmra.mxu1 %vm92_vm0, %v2144_v45 }
0x163b   :  { %2725 = vmatprep.mubr.msk.f32.mxu1 %vm2059_vm5, %v1961_v21 }
0x16fa   :  { %v2720_v61 = vpop.f32.mrf.mxu1 }
0x16fb   :  { %2721 = vmatprep.subr.mxu1 %v2720_v61 }
0x16fc   :  { %v2226_v35 = vpop.f32.mrf.mxu1  ;;  %2722 = vmatpush3.msra.mxu1 %v2720_v61 }
0x16fd   :  { %2723 = vmatprep.subr.mxu1 %v2226_v35 }
0x16fe   :  { %2724 = vmatpush3.msra.mxu1 %v2226_v35 }
0x16ff   :  { %2726 = vmatmul.mubr.msk.f32.vlgmr.msra.gmra.mxu1 %vm2059_vm5, %v1962_v4 }
0x17bf   :  { %v2727_v29 = vpop.f32.mrf.mxu1 }
0x17c0   :  { %v4203_v27 = vadd.f32 %v2727_v29, %v2590_v15 }
0x17c1   :  { %v2305_v25 = vpop.f32.mrf.mxu1 }
0x17c2   :  { %v4205_v22 = vadd.f32 %v2590_v15, %v2305_v25  ;;  %2320 = vrot.lane.b32.xlu1 %v4203_v27, %s3110_s23 }
0x17c4   :  { %2318 = vrot.lane.b32.xlu0 %v4205_v22, %s3110_s23 }
0x1834   :  { %v2321_v34 = vpop.permute.xlu1 %2320 }
0x1835   :  { %2728 = vmatprep.subr.mxu0 %v2321_v34 }
0x1836   :  { %2729 = vmatpush3.msra.mxu0 %v2321_v34  ;;  %v2319_v28 = vpop.permute.xlu0 %2318 }
0x1837   :  { %2730 = vmatprep.subr.mxu0 %v2319_v28 }
0x1838   :  { %2731 = vmatpush3.msra.mxu0 %v2319_v28 }
0x1839   :  { %2733 = vmatmul.mubr.msk.f32.vlgmr.msra.gmra.mxu0 %vm2059_vm5, %v2315_v48  ;;  %2735 = vmatprep.subr.mxu0 %v2426_v2 }
0x183a   :  { %2736 = vmatpush3.msra.mxu0 %v2426_v2 }
0x183b   :  { %2737 = vmatprep.subr.mxu0 %v2425_v59 }
0x183c   :  { %2738 = vmatpush3.msra.mxu0 %v2425_v59 }
0x183d   :  { %2739 = vmatprep.subr.mxu0 %v2424_v37 }
0x183e   :  { %2740 = vmatpush3.msra.mxu0 %v2424_v37 }
0x183f   :  { %2741 = vmatprep.subr.mxu0 %v2423_v53 }
0x1840   :  { %2742 = vmatpush3.msra.mxu0 %v2423_v53 }
0x1841   :  { %2743 = vmatprep.subr.mxu0 %v2422_v30 }
0x1842   :  { %2744 = vmatpush3.msra.mxu0 %v2422_v30 }
0x1843   :  { %2745 = vmatprep.subr.mxu0 %v2421_v55 }
0x1844   :  { %2746 = vmatpush3.msra.mxu0 %v2421_v55 }
0x1845   :  { %2747 = vmatprep.subr.mxu0 %v2420_v32 }
0x1846   :  { %2748 = vmatpush3.msra.mxu0 %v2420_v32 }
0x1847   :  { %2749 = vmatprep.subr.mxu0 %v2419_v10 }
0x1848   :  { %2750 = vmatpush3.msra.mxu0 %v2419_v10 }
0x1849   :  { %2751 = vmatprep.subr.mxu0 %v2418_v58 }
0x184a   :  { %2752 = vmatpush3.msra.mxu0 %v2418_v58 }
0x184b   :  { %2753 = vmatprep.subr.mxu0 %v2417_v38 }
0x184c   :  { %2754 = vmatpush3.msra.mxu0 %v2417_v38 }
0x184d   :  { %2755 = vmatprep.subr.mxu0 %v2416_v47 }
0x184e   :  { %2756 = vmatpush3.msra.mxu0 %v2416_v47 }
0x184f   :  { %2757 = vmatprep.subr.mxu0 %v2415_v40 }
0x1850   :  { %2758 = vmatpush3.msra.mxu0 %v2415_v40 }
0x18f9   :  { %v2734_v43 = vpop.f32.mrf.mxu0 }
0x18fa   :  { %2409 = vrot.lane.b32.xlu0 %v2734_v43, %s3102_s8 }
0x18fb   :  { %v2396_v44 = vpop.f32.mrf.mxu0 }
0x18fc   :  { %2407 = vrot.lane.b32.xlu1 %v2396_v44, %s3102_s8 }
0x196c   :  { %v2410_v26 = vpop.permute.xlu0 %2409 }
0x196d   :  { %v2414_v18 = vsel %vm92_vm0, %v4203_v27, %v2410_v26 }
0x196e   :  { %v2408_v63 = vpop.permute.xlu1 %2407 }
0x196f   :  { %v2413_v60 = vsel %vm92_vm0, %v4205_v22, %v2408_v63 }
0x1970   :  { %2759 = vmatprep.mubr.msk.f32.mxu0 %vm2432_vm6, %v2413_v60 }
0x1971   :  { %2760 = vmatmul.mubr.msk.f32.vlgmr.msra.gmra.mxu0 %vm2432_vm6, %v2414_v18 }
0x1a31   :  { %v2761_v31 = vpop.f32.mrf.mxu0 }
0x1a32   :  { %v2511_v16 = vadd.f32 %v2761_v31, %v2595_v6 }
0x1a33   :  { %v2505_v17 = vpop.f32.mrf.mxu0 }
0x1a34   :  { %v2515_v62 = vmax.f32 %v2511_v16, 0.0  ;;  %v2506_v11 = vadd.f32 %v2595_v6, %v2505_v17 }
0x1a36   :  { %v2514_v24 = vmax.f32 %v2506_v11, 0.0  ;;  %2520 = vrot.lane.b32.xlu0 %v2515_v62, %s3102_s8 }
0x1a38   :  { %2518 = vrot.lane.b32.xlu1 %v2514_v24, %s3102_s8 }
0x1aa8   :  { %v2521_v7 = vpop.permute.xlu0 %2520 }
0x1aa9   :  { %v2525_v33 = vsel %vm92_vm0, %v4203_v27, %v2521_v7 }
0x1aaa   :  { %2527 = vst [vmem:[%s4281_s9 + $0x8] sm:$0xff] %v2525_v33  ;;  %v2519_v36 = vpop.permute.xlu1 %2518 }
0x1aab   :  { %v2524_v0 = vsel %vm92_vm0, %v4205_v22, %v2519_v36 }
0x1aac   :  { %2526 = vst [vmem:[%s4281_s9] sm:$0xff] %v2524_v0 }
0x1aad   :  { %2532 = vsyncpa [#allocation3], 1 }

</bundles_post_ra>
